<compile_context>
chip_gen: v6e
topology: v6e:2x2x1
jax: 0.10.0
libtpu: 0.0.40
codegen_flags: <defaults>
</compile_context>

<pallas_src>
import functools
import math

import jax
import jax.numpy as jnp
from jax.experimental import pallas as pl
from jax.experimental.pallas import tpu as pltpu


def _erf(x):
    # Abramowitz & Stegun 7.1.26 rational approximation (|err| < 1.5e-7), built only
    # from ops guaranteed to lower on the TPU VPU/EUP.  The reciprocal goes to the
    # otherwise-idle EUP slot (approx=True), off the VALU critical path.
    a1, a2, a3, a4, a5 = (0.254829592, -0.284496736, 1.421413741,
                          -1.453152027, 1.061405429)
    p = 0.3275911
    ax = jnp.abs(x)
    t = pl.reciprocal(1.0 + p * ax, approx=True)
    poly = ((((a5 * t + a4) * t + a3) * t + a2) * t + a1) * t
    y = 1.0 - poly * jnp.exp(-ax * ax)
    return jnp.where(x >= 0.0, y, -y)


def _gelu_exact(x):
    # torch.nn.GELU() default (erf form)
    return 0.5 * x * (1.0 + _erf(x * 0.7071067811865475))


def _decoder_kernel(p_ref, w_ref, prm_ref, o_ref, *, eps, n_pix, group_size):
    w = w_ref[...]                                        # (C_out, K)  bf16 (or f32)
    prm = prm_ref[...]                                    # (C_out, 3)  f32
    b = prm[:, 0:1]                                       # conv bias   (C_out, 1)
    g = prm[:, 1:2]                                       # gamma       (C_out, 1)
    be = prm[:, 2:3]                                      # beta        (C_out, 1)

    c_out = w.shape[0]
    # group-average matrix built in-kernel (shape-only constant): pools channel stats
    # within a group and broadcasts the group value back to every channel, with the
    # 1/(group_size * P) normalisation baked in.  floor((i+0.5)/gs) == i//gs exactly.
    row = jax.lax.broadcasted_iota(jnp.int32, (c_out, c_out), 0).astype(jnp.float32)
    col = jax.lax.broadcasted_iota(jnp.int32, (c_out, c_out), 1).astype(jnp.float32)
    inv_gs = jnp.float32(1.0 / group_size)
    same_group = jnp.floor((row + 0.5) * inv_gs) == jnp.floor((col + 0.5) * inv_gs)
    a = jnp.where(same_group, jnp.float32(1.0 / (group_size * n_pix)), jnp.float32(0.0))

    npix = jnp.float32(n_pix)
    n_samples = p_ref.shape[0]                            # static (1 on 2-TC, N on 1-TC)
    for s in range(n_samples):                            # static unroll
        # ---- ConvTranspose2d as one MXU matmul (bf16 operands, f32 accumulate) ----
        y = jnp.dot(w, p_ref[s], preferred_element_type=jnp.float32)   # (C_out, P) f32

        # ---- GroupNorm, single pass: per-channel sum / sum-of-squares ----
        s1 = jnp.sum(y, axis=1, keepdims=True)            # (C_out, 1)
        s2 = jnp.sum(y * y, axis=1, keepdims=True)        # (C_out, 1)
        # fold the conv bias into the statistics analytically (yb = y + b):
        s1b = s1 + npix * b
        s2b = s2 + 2.0 * b * s1 + npix * (b * b)

        mean = jnp.dot(a, s1b, preferred_element_type=jnp.float32)     # (C_out, 1)
        ex2 = jnp.dot(a, s2b, preferred_element_type=jnp.float32)      # (C_out, 1)
        var = jnp.maximum(ex2 - mean * mean, 0.0)          # clamp f32 rounding
        inv = jax.lax.rsqrt(var + jnp.float32(eps))

        scale = g * inv                                    # (C_out, 1)
        shift = (b - mean) * scale + be                    # (C_out, 1)
        z = y * scale + shift                              # one fused scale/shift pass

        # ---- GELU (exact erf form, matching torch.nn.GELU default) ----
        o_ref[s] = _gelu_exact(z).astype(o_ref.dtype)


def _default_samples_per_step(n: int) -> int:
    """Single-TC chips (v5e/v6e): one wide grid step.  Multi-TC (v7x, v4/v5p) or
    unknown: grid=(N,) with 'parallel' so samples split across TensorCores."""
    try:
        kind = jax.devices()[0].device_kind.lower()
    except Exception:
        return 1
    single_tc = ("v5 lite" in kind) or ("v5e" in kind) or ("v6" in kind) or ("trillium" in kind)
    return n if single_tc else 1


@functools.partial(jax.jit,
                   static_argnames=("num_groups", "eps", "conv_dtype", "samples_per_step"))
def decoder_modulo_forward(x, w_t, b, gamma, beta, *, num_groups, eps=1e-5,
                           conv_dtype=jnp.bfloat16, samples_per_step=1):
    """x: (N, C_in, H, W) NCHW (PyTorch convention). Returns (N, C_out, 2H, 2W) f32."""
    N, C_in, H, W = x.shape
    C_out = w_t.shape[1]
    OH, OW = 2 * H, 2 * W
    K = 16 * C_in
    P = OH * OW
    group_size = C_out // num_groups

    S = int(samples_per_step)
    if S < 1 or (N % S) != 0:
        S = 1

    # ConvTranspose2d(k=4, s=2, p=1) == conv over the zero-inserted input, padded by
    # k-1-p = 2, with the flipped kernel.  lax.pad(interior=1) builds the zero-inserted,
    # padded input in a single op (no zeros+scatter, no layout transposes).
    xc = x.astype(conv_dtype)
    u = jax.lax.pad(xc, jnp.zeros((), xc.dtype),
                    ((0, 0, 0), (0, 0, 0), (2, 2, 1), (2, 2, 1)))   # (N, C_in, 2H+3, 2W+3)
    taps = [u[:, :, ky:ky + OH, kx:kx + OW] for ky in range(4) for kx in range(4)]
    patches = jnp.stack(taps, axis=1).reshape(N, K, P)               # (N, 16*C_in, P)

    # flipped weights flattened to (C_out, K) with the same (ky, kx, c_in) row order
    w_flip = w_t[:, :, ::-1, ::-1]                                   # (C_in, C_out, 4, 4)
    w_mat = jnp.transpose(w_flip, (1, 2, 3, 0)).reshape(C_out, K).astype(conv_dtype)

    # single packed parameter block: columns = (conv bias, gamma, beta), all f32
    params = jnp.stack([b, gamma, beta], axis=1).astype(jnp.float32)  # (C_out, 3)

    kernel = functools.partial(_decoder_kernel, eps=float(eps), n_pix=P,
                               group_size=group_size)

    bytes_accessed = (patches.size * patches.dtype.itemsize
                      + w_mat.size * w_mat.dtype.itemsize
                      + params.size * 4
                      + N * C_out * P * 4)

    out = pl.pallas_call(
        kernel,
        out_shape=jax.ShapeDtypeStruct((N, C_out, P), jnp.float32),
        grid_spec=pltpu.PrefetchScalarGridSpec(
            num_scalar_prefetch=0,
            grid=(N // S,),
            in_specs=[
                pl.BlockSpec((S, K, P), lambda n: (n, 0, 0)),         # patches (bf16)
                pl.BlockSpec((C_out, K), lambda n: (0, 0)),           # weights (bf16)
                pl.BlockSpec((C_out, 3), lambda n: (0, 0)),           # packed b/gamma/beta
            ],
            out_specs=pl.BlockSpec((S, C_out, P), lambda n: (n, 0, 0)),
        ),
        compiler_params=pltpu.CompilerParams(dimension_semantics=("parallel",)),
        cost_estimate=pl.CostEstimate(flops=2 * N * C_out * K * P,
                                      transcendentals=N * C_out * P,
                                      bytes_accessed=bytes_accessed),
    )(patches, w_mat, params)

    # (N, C_out, P) is already flat NCHW -> the reshape is free (no transpose).
    return out.reshape(N, C_out, OH, OW)


def _reference(x, w_t, b, gamma, beta, num_groups, eps=1e-5):
    """Pure-JAX f32 reference built directly from the ConvTranspose2d definition."""
    N, C_in, H, W = x.shape
    C_out = w_t.shape[1]
    OH, OW = 2 * H, 2 * W
    full = jnp.zeros((N, C_out, 2 * H + 2, 2 * W + 2), jnp.float32)
    for ky in range(4):
        for kx in range(4):
            contrib = jnp.einsum('nchw,co->nohw',
                                 x.astype(jnp.float32),
                                 w_t[:, :, ky, kx].astype(jnp.float32),
                                 precision=jax.lax.Precision.HIGHEST)
            full = full.at[:, :, ky:ky + 2 * H:2, kx:kx + 2 * W:2].add(contrib)
    conv = full[:, :, 1:1 + OH, 1:1 + OW] + b[None, :, None, None]
    g = conv.reshape(N, num_groups, C_out // num_groups, OH, OW)
    mean = g.mean(axis=(2, 3, 4), keepdims=True)
    var = ((g - mean) ** 2).mean(axis=(2, 3, 4), keepdims=True)
    norm = ((g - mean) / jnp.sqrt(var + eps)).reshape(N, C_out, OH, OW)
    z = norm * gamma[None, :, None, None] + beta[None, :, None, None]
    return 0.5 * z * (1.0 + jax.scipy.special.erf(z / jnp.sqrt(2.0)))


if __name__ == "__main__":
    key = jax.random.PRNGKey(0)
    # DecoderModulo(input_dim=4, output_dim=32, group_num=4), input (2, 4, 16, 16)
    N, C_in, H, W = 2, 4, 16, 16
    C_out, num_groups = 32, 4

    k_x, k_w, k_b, k_g, k_be = jax.random.split(key, 5)
    x = jax.random.normal(k_x, (N, C_in, H, W), jnp.float32)
    bound = 1.0 / math.sqrt(C_out * 16)                    # ConvTranspose2d-style init
    w_t = jax.random.uniform(k_w, (C_in, C_out, 4, 4), jnp.float32, -bound, bound)
    b = jax.random.uniform(k_b, (C_out,), jnp.float32, -bound, bound)
    gamma = 1.0 + 0.1 * jax.random.normal(k_g, (C_out,), jnp.float32)
    beta = 0.1 * jax.random.normal(k_be, (C_out,), jnp.float32)

    sps_default = _default_samples_per_step(N)

    # Primary run: default config (bf16 conv operands, device-selected batching).
    out = decoder_modulo_forward(x, w_t, b, gamma, beta, num_groups=num_groups,
                                 samples_per_step=sps_default)
    out = jax.block_until_ready(out)
    assert out.shape == (N, C_out, 2 * H, 2 * W), out.shape

    # (a) Tight check against a quantization-matched reference (conv inputs rounded to
    #     bf16, everything else exact f32): verifies conv/GroupNorm/GELU algorithm.
    xq = x.astype(jnp.bfloat16).astype(jnp.float32)
    wq = w_t.astype(jnp.bfloat16).astype(jnp.float32)
    ref_q = _reference(xq, wq, b, gamma, beta, num_groups)
    err_q = float(jnp.max(jnp.abs(out - ref_q)))
    assert err_q < 3e-3, f"quantization-matched max abs error {err_q}"

    # (b) Sanity check against the exact f32 module semantics; bf16 conv operands give
    #     ~0.3% relative error that GroupNorm re-amplifies at this small init scale.
    ref = _reference(x, w_t, b, gamma, beta, num_groups)
    err = float(jnp.max(jnp.abs(out - ref)))
    assert err < 5e-2, f"max abs error vs f32 reference {err}"

    # (c) Exercise the other batching path (grid-per-sample vs one wide step).
    sps_other = N if sps_default == 1 else 1
    out2 = jax.block_until_ready(
        decoder_modulo_forward(x, w_t, b, gamma, beta, num_groups=num_groups,
                               samples_per_step=sps_other))
    err2 = float(jnp.max(jnp.abs(out2 - ref_q)))
    assert err2 < 3e-3, f"alt-batching max abs error {err2}"

    print("KERNEL_OK")
</pallas_src>

<mosaic_0001>
module attributes {stable_mosaic.version = 11 : i64} {
  func.func @_decoder_kernel(%arg0: i32, %arg1: memref<1x64x1024xbf16, #tpu.memory_space<vmem>>, %arg2: memref<32x64xbf16, #tpu.memory_space<vmem>>, %arg3: memref<32x3xf32, #tpu.memory_space<vmem>>, %arg4: memref<1x32x1024xf32, #tpu.memory_space<vmem>>) attributes {dimension_semantics = [#tpu.dimension_semantics<parallel>], iteration_bounds = array<i64: 2>, scalar_prefetch = 0 : i64, scratch_operands = 0 : i64, tpu.core_type = #tpu.core_type<tc>, window_params = [{transform_indices = @transform_0, window_bounds = array<i64: 1, 64, 1024>}, {pipeline_mode = #tpu.pipeline_mode<synchronous>, transform_indices = @transform_1, window_bounds = array<i64: 32, 64>}, {pipeline_mode = #tpu.pipeline_mode<synchronous>, transform_indices = @transform_2, window_bounds = array<i64: 32, 3>}, {transform_indices = @transform_3, window_bounds = array<i64: 1, 32, 1024>}]} {
    %c0 = arith.constant 0 : index
    %c0_0 = arith.constant 0 : index
    %0 = vector.load %arg2[%c0, %c0_0] : memref<32x64xbf16, #tpu.memory_space<vmem>>, vector<32x64xbf16>
    %c0_1 = arith.constant 0 : index
    %c0_2 = arith.constant 0 : index
    %1 = vector.load %arg3[%c0_1, %c0_2] : memref<32x3xf32, #tpu.memory_space<vmem>>, vector<32x3xf32>
    %2 = vector.extract_strided_slice %1 {offsets = [0, 0], sizes = [32, 1], strides = [1, 1]} : vector<32x3xf32> to vector<32x1xf32>
    %3 = vector.extract_strided_slice %1 {offsets = [0, 1], sizes = [32, 1], strides = [1, 1]} : vector<32x3xf32> to vector<32x1xf32>
    %4 = vector.extract_strided_slice %1 {offsets = [0, 2], sizes = [32, 1], strides = [1, 1]} : vector<32x3xf32> to vector<32x1xf32>
    %5 = tpu.iota {dimensions = array<i32: 0>} : vector<32x32xi32>
    %6 = arith.sitofp %5 : vector<32x32xi32> to vector<32x32xf32>
    %7 = tpu.iota {dimensions = array<i32: 1>} : vector<32x32xi32>
    %8 = arith.sitofp %7 : vector<32x32xi32> to vector<32x32xf32>
    %cst = arith.constant 5.000000e-01 : f32
    %9 = vector.broadcast %cst : f32 to vector<32x32xf32>
    %10 = arith.addf %6, %9 : vector<32x32xf32>
    %cst_3 = arith.constant 1.250000e-01 : f32
    %11 = vector.broadcast %cst_3 : f32 to vector<32x32xf32>
    %12 = arith.mulf %10, %11 : vector<32x32xf32>
    %13 = math.floor %12 : vector<32x32xf32>
    %cst_4 = arith.constant 5.000000e-01 : f32
    %14 = vector.broadcast %cst_4 : f32 to vector<32x32xf32>
    %15 = arith.addf %8, %14 : vector<32x32xf32>
    %cst_5 = arith.constant 1.250000e-01 : f32
    %16 = vector.broadcast %cst_5 : f32 to vector<32x32xf32>
    %17 = arith.mulf %15, %16 : vector<32x32xf32>
    %18 = math.floor %17 : vector<32x32xf32>
    %19 = arith.cmpf oeq, %13, %18 : vector<32x32xf32>
    %cst_6 = arith.constant 1.22070313E-4 : f32
    %cst_7 = arith.constant 0.000000e+00 : f32
    %20 = vector.broadcast %cst_6 : f32 to vector<32x32xf32>
    %21 = vector.broadcast %cst_7 : f32 to vector<32x32xf32>
    %22 = arith.select %19, %20, %21 : vector<32x32xi1>, vector<32x32xf32>
    %c0_8 = arith.constant 0 : index
    %c0_9 = arith.constant 0 : index
    %c0_10 = arith.constant 0 : index
    %23 = vector.load %arg1[%c0_8, %c0_9, %c0_10] : memref<1x64x1024xbf16, #tpu.memory_space<vmem>>, vector<1x64x1024xbf16>
    %24 = vector.shape_cast %23 : vector<1x64x1024xbf16> to vector<64x1024xbf16>
    %cst_11 = arith.constant dense<0.000000e+00> : vector<32x1024xf32>
    %25 = tpu.matmul %0, %24, %cst_11 {dimension_numbers = #tpu.dot_dimension_numbers<[1], [0], [0], [1], [0, 0, 1, 1], [], []>} : vector<32x64xbf16>, vector<64x1024xbf16>, vector<32x1024xf32> -> vector<32x1024xf32>
    %cst_12 = arith.constant dense<0.000000e+00> : vector<32xf32>
    %26 = vector.multi_reduction <add>, %25, %cst_12 [1] : vector<32x1024xf32> to vector<32xf32>
    %27 = vector.shape_cast %26 : vector<32xf32> to vector<32x1xf32>
    %28 = arith.mulf %25, %25 : vector<32x1024xf32>
    %cst_13 = arith.constant dense<0.000000e+00> : vector<32xf32>
    %29 = vector.multi_reduction <add>, %28, %cst_13 [1] : vector<32x1024xf32> to vector<32xf32>
    %30 = vector.shape_cast %29 : vector<32xf32> to vector<32x1xf32>
    %cst_14 = arith.constant 1.024000e+03 : f32
    %31 = vector.broadcast %cst_14 : f32 to vector<32x1xf32>
    %32 = arith.mulf %31, %2 : vector<32x1xf32>
    %33 = arith.addf %27, %32 : vector<32x1xf32>
    %cst_15 = arith.constant 2.000000e+00 : f32
    %34 = vector.broadcast %cst_15 : f32 to vector<32x1xf32>
    %35 = arith.mulf %34, %2 : vector<32x1xf32>
    %36 = arith.mulf %35, %27 : vector<32x1xf32>
    %37 = arith.addf %30, %36 : vector<32x1xf32>
    %38 = arith.mulf %2, %2 : vector<32x1xf32>
    %cst_16 = arith.constant 1.024000e+03 : f32
    %39 = vector.broadcast %cst_16 : f32 to vector<32x1xf32>
    %40 = arith.mulf %39, %38 : vector<32x1xf32>
    %41 = arith.addf %37, %40 : vector<32x1xf32>
    %cst_17 = arith.constant dense<0.000000e+00> : vector<32x1xf32>
    %42 = tpu.matmul %22, %33, %cst_17 {dimension_numbers = #tpu.dot_dimension_numbers<[1], [0], [0], [1], [0, 0, 1, 1], [], []>} : vector<32x32xf32>, vector<32x1xf32>, vector<32x1xf32> -> vector<32x1xf32>
    %cst_18 = arith.constant dense<0.000000e+00> : vector<32x1xf32>
    %43 = tpu.matmul %22, %41, %cst_18 {dimension_numbers = #tpu.dot_dimension_numbers<[1], [0], [0], [1], [0, 0, 1, 1], [], []>} : vector<32x32xf32>, vector<32x1xf32>, vector<32x1xf32> -> vector<32x1xf32>
    %44 = arith.mulf %42, %42 : vector<32x1xf32>
    %45 = arith.subf %43, %44 : vector<32x1xf32>
    %cst_19 = arith.constant 0.000000e+00 : f32
    %46 = vector.broadcast %cst_19 : f32 to vector<32x1xf32>
    %47 = arith.maximumf %45, %46 : vector<32x1xf32>
    %cst_20 = arith.constant 9.99999974E-6 : f32
    %48 = vector.broadcast %cst_20 : f32 to vector<32x1xf32>
    %49 = arith.addf %47, %48 : vector<32x1xf32>
    %50 = math.rsqrt %49 : vector<32x1xf32>
    %51 = arith.mulf %3, %50 : vector<32x1xf32>
    %52 = arith.subf %2, %42 : vector<32x1xf32>
    %53 = arith.mulf %52, %51 : vector<32x1xf32>
    %54 = arith.addf %53, %4 : vector<32x1xf32>
    %55 = vector.broadcast %51 : vector<32x1xf32> to vector<32x1024xf32>
    %56 = arith.mulf %25, %55 : vector<32x1024xf32>
    %57 = vector.broadcast %54 : vector<32x1xf32> to vector<32x1024xf32>
    %58 = arith.addf %56, %57 : vector<32x1024xf32>
    %cst_21 = arith.constant 5.000000e-01 : f32
    %59 = vector.broadcast %cst_21 : f32 to vector<32x1024xf32>
    %60 = arith.mulf %59, %58 : vector<32x1024xf32>
    %cst_22 = arith.constant 0.707106769 : f32
    %61 = vector.broadcast %cst_22 : f32 to vector<32x1024xf32>
    %62 = arith.mulf %58, %61 : vector<32x1024xf32>
    %63 = math.absf %62 : vector<32x1024xf32>
    %cst_23 = arith.constant 0.327591091 : f32
    %64 = vector.broadcast %cst_23 : f32 to vector<32x1024xf32>
    %65 = arith.mulf %64, %63 : vector<32x1024xf32>
    %cst_24 = arith.constant 1.000000e+00 : f32
    %66 = vector.broadcast %cst_24 : f32 to vector<32x1024xf32>
    %67 = arith.addf %66, %65 : vector<32x1024xf32>
    %68 = tpu.reciprocal %67 {approx = true} : vector<32x1024xf32> -> vector<32x1024xf32>
    %cst_25 = arith.constant 1.06140542 : f32
    %69 = vector.broadcast %cst_25 : f32 to vector<32x1024xf32>
    %70 = arith.mulf %69, %68 : vector<32x1024xf32>
    %cst_26 = arith.constant -1.45315206 : f32
    %71 = vector.broadcast %cst_26 : f32 to vector<32x1024xf32>
    %72 = arith.addf %70, %71 : vector<32x1024xf32>
    %73 = arith.mulf %72, %68 : vector<32x1024xf32>
    %cst_27 = arith.constant 1.42141378 : f32
    %74 = vector.broadcast %cst_27 : f32 to vector<32x1024xf32>
    %75 = arith.addf %73, %74 : vector<32x1024xf32>
    %76 = arith.mulf %75, %68 : vector<32x1024xf32>
    %cst_28 = arith.constant -0.284496725 : f32
    %77 = vector.broadcast %cst_28 : f32 to vector<32x1024xf32>
    %78 = arith.addf %76, %77 : vector<32x1024xf32>
    %79 = arith.mulf %78, %68 : vector<32x1024xf32>
    %cst_29 = arith.constant 0.254829586 : f32
    %80 = vector.broadcast %cst_29 : f32 to vector<32x1024xf32>
    %81 = arith.addf %79, %80 : vector<32x1024xf32>
    %82 = arith.mulf %81, %68 : vector<32x1024xf32>
    %cst_30 = arith.constant 0.000000e+00 : f32
    %83 = vector.broadcast %cst_30 : f32 to vector<32x1024xf32>
    %84 = arith.subf %83, %63 : vector<32x1024xf32>
    %85 = arith.mulf %84, %63 : vector<32x1024xf32>
    %86 = math.exp %85 : vector<32x1024xf32>
    %87 = arith.mulf %82, %86 : vector<32x1024xf32>
    %cst_31 = arith.constant 1.000000e+00 : f32
    %88 = vector.broadcast %cst_31 : f32 to vector<32x1024xf32>
    %89 = arith.subf %88, %87 : vector<32x1024xf32>
    %cst_32 = arith.constant 0.000000e+00 : f32
    %90 = vector.broadcast %cst_32 : f32 to vector<32x1024xf32>
    %91 = arith.cmpf oge, %62, %90 : vector<32x1024xf32>
    %cst_33 = arith.constant 0.000000e+00 : f32
    %92 = vector.broadcast %cst_33 : f32 to vector<32x1024xf32>
    %93 = arith.subf %92, %89 : vector<32x1024xf32>
    %94 = arith.select %91, %89, %93 : vector<32x1024xi1>, vector<32x1024xf32>
    %cst_34 = arith.constant 1.000000e+00 : f32
    %95 = vector.broadcast %cst_34 : f32 to vector<32x1024xf32>
    %96 = arith.addf %95, %94 : vector<32x1024xf32>
    %97 = arith.mulf %60, %96 : vector<32x1024xf32>
    %c0_35 = arith.constant 0 : index
    %c0_36 = arith.constant 0 : index
    %c0_37 = arith.constant 0 : index
    %98 = vector.load %arg4[%c0_35, %c0_36, %c0_37] : memref<1x32x1024xf32, #tpu.memory_space<vmem>>, vector<1x32x1024xf32>
    %99 = vector.shape_cast %98 : vector<1x32x1024xf32> to vector<32x1024xf32>
    %100 = vector.shape_cast %97 : vector<32x1024xf32> to vector<1x32x1024xf32>
    tpu.vector_store %arg4[%c0_35, %c0_36, %c0_37], %100 {strides = array<i32>} : memref<1x32x1024xf32, #tpu.memory_space<vmem>>, vector<1x32x1024xf32>,
    return
  }
  func.func @transform_0(%arg0: i32) -> (i32, i32, i32) {
    %c0_i32 = arith.constant 0 : i32
    %c0_i32_0 = arith.constant 0 : i32
    %c0_i32_1 = arith.constant 0 : i32
    return %arg0, %c0_i32, %c0_i32_0 : i32, i32, i32
  }
  func.func @transform_1(%arg0: i32) -> (i32, i32) {
    %c0_i32 = arith.constant 0 : i32
    %c0_i32_0 = arith.constant 0 : i32
    %c0_i32_1 = arith.constant 0 : i32
    return %c0_i32, %c0_i32_0 : i32, i32
  }
  func.func @transform_2(%arg0: i32) -> (i32, i32) {
    %c0_i32 = arith.constant 0 : i32
    %c0_i32_0 = arith.constant 0 : i32
    %c0_i32_1 = arith.constant 0 : i32
    return %c0_i32, %c0_i32_0 : i32, i32
  }
  func.func @transform_3(%arg0: i32) -> (i32, i32, i32) {
    %c0_i32 = arith.constant 0 : i32
    %c0_i32_0 = arith.constant 0 : i32
    %c0_i32_1 = arith.constant 0 : i32
    return %arg0, %c0_i32, %c0_i32_0 : i32, i32, i32
  }
}

</mosaic_0001>

<bundles_post_ra>
// kernel: decoder_modulo_forward.1
= control target key start
LH: loop header
LB: loop body
LE: loop exit
PB: predicated region body
PF: predicated region fallthrough
CT: control target
= control target key end

     0   :  { %s2355_s12 = smov 0   ;;  %s3439_s0 = inlined_call_operand.vmem [shape: bf16[2,64,1024], index: 0, kind: input, shape index: {}]   ;;  %s3440_s1 = inlined_call_operand.vmem [shape: bf16[32,64], index: 1, kind: input, shape index: {}]   ;;  %s3441_s2 = inlined_call_operand.vmem [shape: f32[32,3], index: 2, kind: input, shape index: {}]   ;;  %s3442_s3 = inlined_call_operand.vmem [shape: f32[2,32,1024], index: 3, kind: output, shape index: {}]  }
   0x1 LB: > { %s2058_s13 = sadd.s32 4294967295, %s2327_s12   ;;  %p2062_p0 = scmp.ge.s32.totalorder %s2327_s12, 1  ;;  %s2327_s12 = sphi %s2355_s12, %s13_s12  }
   0x2   : > { %p137_p1 = scmp.lt.s32.totalorder %s2327_s12, 3 }
   0x4   : > { %p138_p2 = pnand %p2062_p0, %p137_p1 }
   0x6   : > { %141 = sbr.rel (%p138_p2) target bundleno = 1223 (0x4c7), region = 32 }
   0xb   : > { %p161_p3 = scmp.lt.s32.totalorder %s2058_s13, 1  ;;  %v2329_v0 = vmov 0   ;;  %v2183_v41 = vld [vmem:[%s3440_s1] sm:$0xff]   ;;  %vm417_vm0 = vcmask 523264   ;;  %v2184_v58 = vld [vmem:[%s3440_s1 + $0x8] sm:$0xff]   ;;  %vm772_vm2 = vcmask 261120  }
   0xc   : > { %456 = vmatprep.mubr.bf16.mxu0 %v2329_v0  ;;  %509 = vmatprep.mubr.bf16.mxu1 %v2329_v0  ;;  %s2331_s30 = smov 1   ;;  %s2333_s4 = smov 126  }
   0xd   : > { %s3521_s13 = smov (!%p161_p3, %s2058_s13), 1  ;;  %s2334_s5 = smov 127  }
   0xe   : > { %s2119_s14 = sshll.u32 %s3521_s13, 8 }
   0xf   : > { %s2373_s17 = scalar_lea.vmem %s3439_s0, %s2119_s14  ;;  %s2901_s8 = scalar_lea.vmem %s3442_s3, %s2119_s14 }
  0x10   : > { %v239_v1 = vld [vmem:[%s2373_s17 + $0xc0] sm:$0xff]  ;;  %v240_v3 = vld [vmem:[%s2373_s17 + $0xc8] sm:$0xff]  ;;  %v241_v31 = vld [vmem:[%s2373_s17 + $0xd0] sm:$0xff] }
  0x11   : > { %v243_v2 = vld [vmem:[%s2373_s17 + $0xe0] sm:$0xff]  ;;  %v244_v5 = vld [vmem:[%s2373_s17 + $0xe8] sm:$0xff]  ;;  %v245_v32 = vld [vmem:[%s2373_s17 + $0xf0] sm:$0xff] }
  0x12   : > { %v2094_v4 = vcombine.high %v239_v1, %v243_v2  ;;  %v2093_v6 = vcombine.low %v239_v1, %v243_v2  ;;  %v231_v7 = vld [vmem:[%s2373_s17 + $0x80] sm:$0xff]  ;;  %v2096_v9 = vcombine.high %v240_v3, %v244_v5  ;;  %v2095_v10 = vcombine.low %v240_v3, %v244_v5  ;;  %v232_v12 = vld [vmem:[%s2373_s17 + $0x88] sm:$0xff]  ;;  %v242_v33 = vld [vmem:[%s2373_s17 + $0xd8] sm:$0xff] }
  0x13   : > { %v235_v8 = vld [vmem:[%s2373_s17 + $0xa0] sm:$0xff]  ;;  %v236_v13 = vld [vmem:[%s2373_s17 + $0xa8] sm:$0xff]  ;;  %v246_v34 = vld [vmem:[%s2373_s17 + $0xf8] sm:$0xff]  ;;  %v2098_v37 = vcombine.high %v241_v31, %v245_v32  ;;  %v2097_v44 = vcombine.low %v241_v31, %v245_v32 }
  0x14   : > { %v2086_v11 = vcombine.high %v231_v7, %v235_v8  ;;  %v223_v14 = vld [vmem:[%s2373_s17 + $0x40] sm:$0xff]  ;;  %432 = vmatprep.subr.bf16.mxu0 %v2094_v4  ;;  %v2088_v15 = vcombine.high %v232_v12, %v236_v13  ;;  %v224_v17 = vld [vmem:[%s2373_s17 + $0x48] sm:$0xff]  ;;  %485 = vmatprep.subr.bf16.mxu1 %v2096_v9  ;;  %v2085_v19 = vcombine.low %v231_v7, %v235_v8  ;;  %v233_v39 = vld [vmem:[%s2373_s17 + $0x90] sm:$0xff] }
  0x15   : > { %v227_v16 = vld [vmem:[%s2373_s17 + $0x60] sm:$0xff]  ;;  %v228_v18 = vld [vmem:[%s2373_s17 + $0x68] sm:$0xff]  ;;  %433 = vmatpush1.bf16.msra.mxu0 %v2093_v6  ;;  %486 = vmatpush1.bf16.msra.mxu1 %v2095_v10  ;;  %v2087_v20 = vcombine.low %v232_v12, %v236_v13  ;;  %v2100_v38 = vcombine.high %v242_v33, %v246_v34  ;;  %v237_v40 = vld [vmem:[%s2373_s17 + $0xb0] sm:$0xff]  ;;  %v2099_v45 = vcombine.low %v242_v33, %v246_v34 }
  0x16   : > { %434 = vmatprep.subr.bf16.mxu0 %v2086_v11  ;;  %v2078_v21 = vcombine.high %v223_v14, %v227_v16  ;;  %487 = vmatprep.subr.bf16.mxu1 %v2088_v15  ;;  %v2080_v22 = vcombine.high %v224_v17, %v228_v18  ;;  %v215_v23 = vld [vmem:[%s2373_s17] sm:$0xff]  ;;  %v216_v25 = vld [vmem:[%s2373_s17 + $0x8] sm:$0xff]  ;;  %v2077_v27 = vcombine.low %v223_v14, %v227_v16  ;;  %v234_v42 = vld [vmem:[%s2373_s17 + $0x98] sm:$0xff] }
  0x17   : > { %v219_v24 = vld [vmem:[%s2373_s17 + $0x20] sm:$0xff]  ;;  %v220_v26 = vld [vmem:[%s2373_s17 + $0x28] sm:$0xff]  ;;  %v2079_v28 = vcombine.low %v224_v17, %v228_v18  ;;  %v238_v43 = vld [vmem:[%s2373_s17 + $0xb8] sm:$0xff]  ;;  %v2090_v46 = vcombine.high %v233_v39, %v237_v40  ;;  %v2089_v52 = vcombine.low %v233_v39, %v237_v40 }
  0x18   : > { %v2070_v29 = vcombine.high %v215_v23, %v219_v24  ;;  %v2072_v30 = vcombine.high %v216_v25, %v220_v26  ;;  %v2069_v35 = vcombine.low %v215_v23, %v219_v24  ;;  %v2071_v36 = vcombine.low %v216_v25, %v220_v26  ;;  %v225_v48 = vld [vmem:[%s2373_s17 + $0x50] sm:$0xff]  ;;  %v226_v50 = vld [vmem:[%s2373_s17 + $0x58] sm:$0xff] }
  0x19   : > { %435 = vmatpush1.bf16.msra.mxu0 %v2085_v19  ;;  %488 = vmatpush1.bf16.msra.mxu1 %v2087_v20  ;;  %v2092_v47 = vcombine.high %v234_v42, %v238_v43  ;;  %v229_v49 = vld [vmem:[%s2373_s17 + $0x70] sm:$0xff]  ;;  %v230_v51 = vld [vmem:[%s2373_s17 + $0x78] sm:$0xff]  ;;  %v2091_v53 = vcombine.low %v234_v42, %v238_v43 }
  0x1a   : > { %436 = vmatprep.subr.bf16.mxu0 %v2078_v21  ;;  %489 = vmatprep.subr.bf16.mxu1 %v2080_v22  ;;  %v2082_v54 = vcombine.high %v225_v48, %v229_v49  ;;  %v2084_v55 = vcombine.high %v226_v50, %v230_v51  ;;  %v217_v56 = vld [vmem:[%s2373_s17 + $0x10] sm:$0xff]  ;;  %v218_v59 = vld [vmem:[%s2373_s17 + $0x18] sm:$0xff]  ;;  %v2081_v61 = vcombine.low %v225_v48, %v229_v49 }
  0x1b   : > { %v221_v57 = vld [vmem:[%s2373_s17 + $0x30] sm:$0xff]  ;;  %v222_v60 = vld [vmem:[%s2373_s17 + $0x38] sm:$0xff]  ;;  %v2083_v62 = vcombine.low %v226_v50, %v230_v51 }
  0x1c   : > { %v2074_v63 = vcombine.high %v217_v56, %v221_v57  ;;  %v2076_v1 = vcombine.high %v218_v59, %v222_v60  ;;  %v2073_v2 = vcombine.low %v217_v56, %v221_v57  ;;  %v2075_v3 = vcombine.low %v218_v59, %v222_v60 }
  0x1d   : > { %437 = vmatpush1.bf16.msra.mxu0 %v2077_v27  ;;  %490 = vmatpush1.bf16.msra.mxu1 %v2079_v28 }
  0x1e   : > { %438 = vmatprep.subr.bf16.mxu0 %v2070_v29  ;;  %491 = vmatprep.subr.bf16.mxu1 %v2072_v30 }
  0x21   : > { %439 = vmatpush1.bf16.msra.mxu0 %v2069_v35  ;;  %492 = vmatpush1.bf16.msra.mxu1 %v2071_v36 }
  0x22   : > { %538 = vmatprep.subr.bf16.mxu0 %v2098_v37  ;;  %591 = vmatprep.subr.bf16.mxu1 %v2100_v38 }
  0x24   : > { %2101 = vmatmul.mubr.msk.bf16.vlgmr.msra.gmra.mxu0 %vm417_vm0, %v2183_v41  ;;  %2103 = vmatmul.mubr.msk.bf16.vlgmr.msra.gmra.mxu1 %vm417_vm0, %v2183_v41 }
  0x25   : > { %539 = vmatpush1.bf16.msra.mxu0 %v2097_v44  ;;  %592 = vmatpush1.bf16.msra.mxu1 %v2099_v45 }
  0x26   : > { %540 = vmatprep.subr.bf16.mxu0 %v2090_v46  ;;  %593 = vmatprep.subr.bf16.mxu1 %v2092_v47 }
  0x27   : > { %466 = vmatprep.mubr.bf16.mxu0 %v2329_v0  ;;  %519 = vmatprep.mubr.bf16.mxu1 %v2329_v0 }
  0x29   : > { %541 = vmatpush1.bf16.msra.mxu0 %v2089_v52  ;;  %594 = vmatpush1.bf16.msra.mxu1 %v2091_v53 }
  0x2a   : > { %542 = vmatprep.subr.bf16.mxu0 %v2082_v54  ;;  %595 = vmatprep.subr.bf16.mxu1 %v2084_v55 }
  0x2c   : > { %2102 = vmatmul.mubr.msk.bf16.gmra.mxu0 %vm417_vm0, %v2184_v58  ;;  %2104 = vmatmul.mubr.msk.bf16.gmra.mxu1 %vm417_vm0, %v2184_v58 }
  0x2d   : > { %543 = vmatpush1.bf16.msra.mxu0 %v2081_v61  ;;  %596 = vmatpush1.bf16.msra.mxu1 %v2083_v62 }
  0x2e   : > { %544 = vmatprep.subr.bf16.mxu0 %v2074_v63  ;;  %597 = vmatprep.subr.bf16.mxu1 %v2076_v1 }
  0x2f   : > { %562 = vmatprep.mubr.bf16.mxu0 %v2329_v0  ;;  %615 = vmatprep.mubr.bf16.mxu1 %v2329_v0 }
  0x31   : > { %545 = vmatpush1.bf16.msra.mxu0 %v2073_v2  ;;  %598 = vmatpush1.bf16.msra.mxu1 %v2075_v3 }
  0x34   : > { %2105 = vmatmul.mubr.msk.bf16.vlgmr.msra.gmra.mxu0 %vm417_vm0, %v2183_v41  ;;  %2107 = vmatmul.mubr.msk.bf16.vlgmr.msra.gmra.mxu1 %vm417_vm0, %v2183_v41 }
  0x35   : > { %572 = vmatprep.mubr.bf16.mxu0 %v2329_v0  ;;  %625 = vmatprep.mubr.bf16.mxu1 %v2329_v0 }
  0x3c   : > { %2106 = vmatmul.mubr.msk.bf16.gmra.mxu0 %vm417_vm0, %v2184_v58  ;;  %2108 = vmatmul.mubr.msk.bf16.gmra.mxu1 %vm417_vm0, %v2184_v58 }
  0xe4   : > { %v2427_v4 = vpop.f32.mrf.mxu0  ;;  %v2429_v5 = vpop.f32.mrf.mxu1 }
  0xe5   : > { %v672_v33 = vmul.f32 %v2427_v4, %v2427_v4  ;;  %v674_v37 = vmul.f32 %v2429_v5, %v2429_v5 }
  0xe6   : > { %v2431_v6 = vpop.f32.mrf.mxu0  ;;  %v2433_v7 = vpop.f32.mrf.mxu1 }
  0xe7   : > { %v636_v22 = vadd.f32 %v2431_v6, %v2427_v4  ;;  %v673_v26 = vmul.f32 %v2431_v6, %v2431_v6  ;;  %v675_v54 = vmul.f32 %v2433_v7, %v2433_v7 }
  0xe8   : > { %v2435_v8 = vpop.f32.mrf.mxu0  ;;  %v2437_v9 = vpop.f32.mrf.mxu1 }
  0xe9   : > { %v680_v34 = vmul.f32 %v2435_v8, %v2435_v8  ;;  %v704_v42 = vadd.f32 %v673_v26, %v672_v33  ;;  %v637_v43 = vadd.f32 %v636_v22, %v2429_v5  ;;  %v682_v50 = vmul.f32 %v2437_v9, %v2437_v9 }
  0xea   : > { %v2439_v10 = vpop.f32.mrf.mxu0  ;;  %v2441_v11 = vpop.f32.mrf.mxu1 }
  0xeb   : > { %v645_v15 = vadd.f32 %v2439_v10, %v2435_v8  ;;  %v681_v27 = vmul.f32 %v2439_v10, %v2439_v10  ;;  %v638_v59 = vadd.f32 %v637_v43, %v2433_v7  ;;  %v705_v60 = vadd.f32 %v704_v42, %v674_v37 }
  0xec   : > { %v2443_v12 = vpop.f32.mrf.mxu0  ;;  %v2445_v13 = vpop.f32.mrf.mxu1 }
  0xed   : > { %v688_v20 = vmul.f32 %v2443_v12, %v2443_v12  ;;  %v646_v23 = vadd.f32 %v645_v15, %v2437_v9  ;;  %v690_v28 = vmul.f32 %v2445_v13, %v2445_v13  ;;  %v713_v44 = vadd.f32 %v681_v27, %v680_v34 }
  0xee   : > { %v2447_v14 = vpop.f32.mrf.mxu0  ;;  %v2451_v16 = vpop.f32.mrf.mxu1  ;;  %v706_v34 = vadd.f32 %v705_v60, %v675_v54 }
  0xef   : > { %v689_v17 = vmul.f32 %v2447_v14, %v2447_v14  ;;  %v654_v24 = vadd.f32 %v2447_v14, %v2443_v12  ;;  %v647_v38 = vadd.f32 %v646_v23, %v2441_v11  ;;  %v691_v51 = vmul.f32 %v2451_v16, %v2451_v16 }
  0xf0   : > { %v2455_v18 = vpop.f32.mrf.mxu0  ;;  %v2457_v19 = vpop.f32.mrf.mxu1  ;;  %v714_v61 = vadd.f32 %v713_v44, %v682_v50 }
  0xf1   : > { %3470 = vst [vmem:[#allocation2_spill] sm:$0xff] %v2455_v18  ;;  %3471 = vst [vmem:[#allocation3_spill] sm:$0xff] %v2457_v19  ;;  %v722_v29 = vadd.f32 %v689_v17, %v688_v20  ;;  %v655_v39 = vadd.f32 %v654_v24, %v2445_v13  ;;  %v696_v40 = vmul.f32 %v2455_v18, %v2455_v18 }
  0xf2   : > { %v2461_v21 = vpop.f32.mrf.mxu0  ;;  %v2468_v25 = vpop.f32.mrf.mxu1  ;;  %v698_v56 = vmul.f32 %v2457_v19, %v2457_v19  ;;  %v683_v20 = vmul.f32 %v2441_v11, %v2441_v11 }
  0xf3   : > { %3472 = vst [vmem:[#allocation4_spill] sm:$0xff] %v2461_v21  ;;  %3473 = vst [vmem:[#allocation5_spill] sm:$0xff] %v2468_v25  ;;  %v697_v31 = vmul.f32 %v2461_v21, %v2461_v21  ;;  %v663_v35 = vadd.f32 %v2461_v21, %v2455_v18  ;;  %v723_v45 = vadd.f32 %v722_v29, %v690_v28 }
  0xf4   : > { %v2476_v30 = vpop.f32.mrf.mxu0  ;;  %v2480_v32 = vpop.f32.mrf.mxu1  ;;  %v656_v55 = vadd.f32 %v655_v39, %v2451_v16  ;;  %v699_v23 = vmul.f32 %v2468_v25, %v2468_v25 }
  0xf5   : > { %v731_v47 = vadd.f32 %v697_v31, %v696_v40  ;;  %v664_v52 = vadd.f32 %v663_v35, %v2457_v19  ;;  %v724_v62 = vadd.f32 %v723_v45, %v691_v51  ;;  %v715_v35 = vadd.f32 %v714_v61, %v683_v20 }
  0xf6   : > { %v2488_v36 = vpop.f32.mrf.mxu0  ;;  %v2496_v41 = vpop.f32.mrf.mxu1  ;;  %v639_v37 = vadd.f32 %v638_v59, %v2476_v30 }
  0xf7   : > { %v732_v1 = vadd.f32 %v731_v47, %v698_v56  ;;  %v665_v22 = vadd.f32 %v664_v52, %v2468_v25  ;;  %v677_v60 = vmul.f32 %v2488_v36, %v2488_v36 }
  0xf8   : > { %v2499_v46 = vpop.f32.mrf.mxu0  ;;  %v2502_v49 = vpop.f32.mrf.mxu1  ;;  %v640_v59 = vadd.f32 %v639_v37, %v2488_v36 }
  0xf9   : > { %v648_v48 = vadd.f32 %v647_v38, %v2499_v46  ;;  %v684_v24 = vmul.f32 %v2499_v46, %v2499_v46  ;;  %v676_v38 = vmul.f32 %v2476_v30, %v2476_v30  ;;  %v733_v40 = vadd.f32 %v732_v1, %v699_v23 }
  0xfa   : > { %v2509_v53 = vpop.f32.mrf.mxu0  ;;  %v2517_v58 = vpop.f32.mrf.mxu1 }
  0xfb   : > { %v649_v57 = vadd.f32 %v648_v48, %v2509_v53  ;;  %v716_v47 = vadd.f32 %v715_v35, %v684_v24  ;;  %v685_v48 = vmul.f32 %v2509_v53, %v2509_v53 }
  0xfc   : > { %v2520_v63 = vpop.f32.mrf.mxu0  ;;  %v2525_v15 = vpop.f32.mrf.mxu1 }
  0xfd   : > { %3474 = vst [vmem:[#allocation6_spill] sm:$0xff] %v2520_v63  ;;  %v657_v2 = vadd.f32 %v656_v55, %v2520_v63  ;;  %v692_v3 = vmul.f32 %v2520_v63, %v2520_v63  ;;  %3475 = vst [vmem:[#allocation7_spill] sm:$0xff] %v2525_v15  ;;  %v650_v17 = vadd.f32 %v649_v57, %v2502_v49 }
  0xfe   : > { %v2535_v26 = vpop.f32.mrf.mxu0  ;;  %v2540_v31 = vpop.f32.mrf.mxu1  ;;  %v694_v50 = vmul.f32 %v2525_v15, %v2525_v15 }
  0xff   : > { %3476 = vst [vmem:[#allocation8_spill] sm:$0xff] %v2535_v26  ;;  %v725_v27 = vadd.f32 %v724_v62, %v692_v3  ;;  %v658_v28 = vadd.f32 %v657_v2, %v2535_v26  ;;  %v693_v29 = vmul.f32 %v2535_v26, %v2535_v26  ;;  %3477 = vst [vmem:[#allocation9_spill] sm:$0xff] %v2540_v31 }
 0x100   : > { %v651_v33 = vadd.f32 %v650_v17, %v2517_v58  ;;  %v2546_v39 = vpop.f32.mrf.mxu0  ;;  %v2551_v44 = vpop.f32.mrf.mxu1  ;;  %v707_v62 = vadd.f32 %v706_v34, %v676_v38  ;;  %v717_v17 = vadd.f32 %v716_v47, %v685_v48  ;;  %v695_v34 = vmul.f32 %v2540_v31, %v2540_v31 }
 0x101   : > { %3478 = vst [vmem:[#allocation10_spill] sm:$0xff] %v2546_v39  ;;  %v666_v42 = vadd.f32 %v665_v22, %v2546_v39  ;;  %v700_v43 = vmul.f32 %v2546_v39, %v2546_v39  ;;  %3479 = vst [vmem:[#allocation11_spill] sm:$0xff] %v2551_v44  ;;  %v659_v45 = vadd.f32 %v658_v28, %v2525_v15  ;;  %v180_v48 = vlaneseq }
 0x102   : > { %652 = vadd.xlane.f32.xlu1 %v651_v33  ;;  %v2558_v51 = vpop.f32.mrf.mxu0  ;;  %v726_v52 = vadd.f32 %v725_v27, %v693_v29  ;;  %v2567_v61 = vpop.f32.mrf.mxu1  ;;  %v702_v1 = vmul.f32 %v2551_v44, %v2551_v44  ;;  %v678_v27 = vmul.f32 %v2480_v32, %v2480_v32  ;;  %v641_v28 = vadd.f32 %v640_v59, %v2480_v32 }
 0x103   : > { %3480 = vst [vmem:[#allocation12_spill] sm:$0xff] %v2558_v51  ;;  %v734_v54 = vadd.f32 %v733_v40, %v700_v43  ;;  %v667_v55 = vadd.f32 %v666_v42, %v2558_v51  ;;  %v701_v56 = vmul.f32 %v2558_v51, %v2558_v51  ;;  %v660_v57 = vadd.f32 %v659_v45, %v2540_v31 }
 0x104   : > { %3481 = vst [vmem:[#allocation13_spill] sm:$0xff] %v2567_v61  ;;  %v703_v22 = vmul.f32 %v2567_v61, %v2567_v61  ;;  %v727_v24 = vadd.f32 %v726_v52, %v694_v50  ;;  %v686_v29 = vmul.f32 %v2502_v49, %v2502_v49  ;;  %v708_v35 = vadd.f32 %v707_v62, %v677_v60 }
 0x105   : > { %661 = vadd.xlane.f32.xlu0 %v660_v57  ;;  %v668_v2 = vadd.f32 %v667_v55, %v2551_v44  ;;  %v735_v3 = vadd.f32 %v734_v54, %v701_v56  ;;  %v642_v40 = vadd.f32 %v641_v28, %v2496_v41  ;;  %v687_v42 = vmul.f32 %v2517_v58, %v2517_v58 }
 0x106   : > { %v728_v37 = vadd.f32 %v727_v24, %v695_v34  ;;  %v718_v38 = vadd.f32 %v717_v17, %v686_v29  ;;  %v709_v43 = vadd.f32 %v708_v35, %v678_v27  ;;  %v679_v47 = vmul.f32 %v2496_v41, %v2496_v41 }
 0x107   : > { %v669_v20 = vadd.f32 %v668_v2, %v2567_v61  ;;  %v736_v23 = vadd.f32 %v735_v3, %v702_v1  ;;  %v181_v52 = vshrl.u32 %v180_v48, 7  ;;  %v190_v54 = vand.u32 127, %v180_v48 }
 0x108   : > { %v719_v45 = vadd.f32 %v718_v38, %v687_v42  ;;  %v710_v50 = vadd.f32 %v709_v43, %v679_v47 }
 0x109   : > { %670 = vadd.xlane.f32.xlu0 %v669_v20  ;;  %v737_v33 = vadd.f32 %v736_v23, %v703_v22  ;;  %v182_v55 = vadd.s32 8, %v181_v52  ;;  %v185_v56 = vcvt.s32.f32 %v181_v52  ;;  %v191_v57 = vcvt.s32.f32 %v190_v54 }
 0x10a   : > { %v183_v1 = vadd.s32 16, %v181_v52  ;;  %v184_v22 = vadd.s32 24, %v181_v52  ;;  %v2603_v52 = vld [vmem:[%s3441_s2 + $0x10] sm:$0xff] }
 0x10b   : > { %738 = vadd.xlane.f32.xlu1 %v737_v33  ;;  %v186_v59 = vcvt.s32.f32 %v182_v55  ;;  %v192_v60 = vadd.f32 0.5, %v185_v56  ;;  %v204_v62 = vadd.f32 0.5, %v191_v57 }
 0x10c   : > { %v187_v20 = vcvt.s32.f32 %v183_v1  ;;  %v188_v29 = vcvt.s32.f32 %v184_v22  ;;  %v742_v1 = vmul.f32 1024.0, %v2603_v52 }
 0x10d   : > { %729 = vadd.xlane.f32.xlu0 %v728_v37  ;;  %v193_v2 = vadd.f32 0.5, %v186_v59  ;;  %v196_v3 = vmul.f32 0.125, %v192_v60  ;;  %v205_v17 = vmul.f32 0.125, %v204_v62  ;;  %v2330_v37 = vmov 0.0   ;;  %v2612_v59 = vld [vmem:[%s3441_s2 + $0x8] sm:$0xff] }
 0x10e   : > { %v194_v28 = vadd.f32 0.5, %v187_v20  ;;  %v195_v35 = vadd.f32 0.5, %v188_v29  ;;  %v762_v62 = vmul.f32 %v2603_v52, %v2603_v52  ;;  %v741_v20 = vmul.f32 1024.0, %v2612_v59 }
 0x10f   : > { %643 = vadd.xlane.f32.xlu1 %v642_v40  ;;  %v197_v23 = vmul.f32 0.125, %v193_v2  ;;  %v200_v24 = vfloor.f32 %v196_v3  ;;  %v206_v27 = vfloor.f32 %v205_v17  ;;  %v750_v2 = vmul.f32 2.0, %v2603_v52  ;;  %v2621_v3 = vld [vmem:[%s3441_s2] sm:$0xff] }
 0x110   : > { %v198_v34 = vmul.f32 0.125, %v194_v28  ;;  %v199_v43 = vmul.f32 0.125, %v195_v35  ;;  %v766_v29 = vmul.f32 1024.0, %v762_v62 }
 0x111   : > { %720 = vadd.xlane.f32.xlu0 %v719_v45  ;;  %v201_v33 = vfloor.f32 %v197_v23  ;;  %vm207_vm1 = vcmp.eq.f32.partialorder %v200_v24, %v206_v27 }
 0x112   : > { %v211_v38 = vsel %vm207_vm1, 0.00012207031, %v2330_v37  ;;  %v202_v42 = vfloor.f32 %v198_v34  ;;  %v203_v45 = vfloor.f32 %v199_v43  ;;  %v748_v43 = vmul.f32 2.0, %v2621_v3 }
 0x113   : > { %711 = vadd.xlane.f32.xlu1 %v710_v50  ;;  %vm208_vm3 = vcmp.eq.f32.partialorder %v201_v33, %v206_v27  ;;  %2145 = vmatprep.mubr.msk.f32.mxu0 %vm772_vm2, %v211_v38  ;;  %v2598_v50 = vld [vmem:[%s3441_s2 + $0x18] sm:$0xff]  ;;  %v740_v33 = vmul.f32 1024.0, %v2621_v3 }
 0x114   : > { %v2588_v40 = vsel %vm208_vm3, 0.00012207031, %v2330_v37  ;;  %2159 = vmatprep.mubr.msk.f32.mxu1 %vm772_vm2, %v211_v38  ;;  %vm209_vm4 = vcmp.eq.f32.partialorder %v202_v42, %v206_v27  ;;  %vm210_vm5 = vcmp.eq.f32.partialorder %v203_v45, %v206_v27  ;;  %v743_v55 = vmul.f32 1024.0, %v2598_v50 }
 0x115   : > { %v2591_v47 = vsel %vm209_vm4, 0.00012207031, %v2330_v37  ;;  %v2593_v48 = vsel %vm210_vm5, 0.00012207031, %v2330_v37  ;;  %v751_v56 = vmul.f32 2.0, %v2598_v50  ;;  %v763_v57 = vmul.f32 %v2598_v50, %v2598_v50 }
 0x116   : > { %v749_v27 = vmul.f32 2.0, %v2612_v59  ;;  %v761_v38 = vmul.f32 %v2612_v59, %v2612_v59 }
 0x117   : > { %v767_v24 = vmul.f32 1024.0, %v763_v57  ;;  %v760_v57 = vmul.f32 %v2621_v3, %v2621_v3 }
 0x18b   : > { %v653_v60 = vpop.xlane.xlu1 %652 }
 0x18c   : > { %v745_v45 = vadd.f32 %v741_v20, %v653_v60  ;;  %v764_v20 = vmul.f32 1024.0, %v760_v57 }
 0x18e   : > { %v662_v54 = vpop.xlane.xlu0 %661 }
 0x18f   : > { %v746_v34 = vadd.f32 %v742_v1, %v662_v54  ;;  %v754_v35 = vmul.f32 %v750_v2, %v662_v54  ;;  %v753_v1 = vmul.f32 %v749_v27, %v653_v60 }
 0x192   : > { %v671_v17 = vpop.xlane.xlu0 %670 }
 0x193   : > { %v747_v22 = vadd.f32 %v743_v55, %v671_v17  ;;  %v755_v23 = vmul.f32 %v751_v56, %v671_v17  ;;  %v765_v17 = vmul.f32 1024.0, %v761_v38 }
 0x194   : > { %v739_v28 = vpop.xlane.xlu1 %738 }
 0x195   : > { %v759_v37 = vadd.f32 %v755_v23, %v739_v28  ;;  %2137 = vmatprep.subr.mxu0 %v747_v22 }
 0x196   : > { %2138 = vmatpush3.msra.mxu0 %v747_v22  ;;  %v730_v42 = vpop.xlane.xlu0 %729 }
 0x197   : > { %v771_v55 = vadd.f32 %v767_v24, %v759_v37  ;;  %v758_v56 = vadd.f32 %v754_v35, %v730_v42  ;;  %2139 = vmatprep.subr.mxu0 %v746_v34 }
 0x198   : > { %v644_v62 = vpop.xlane.xlu1 %643  ;;  %2140 = vmatpush3.msra.mxu0 %v746_v34 }
 0x199   : > { %v770_v54 = vadd.f32 %v766_v29, %v758_v56  ;;  %v744_v2 = vadd.f32 %v740_v33, %v644_v62  ;;  %2141 = vmatprep.subr.mxu0 %v745_v45  ;;  %2151 = vmatprep.subr.mxu1 %v771_v55  ;;  %v752_v23 = vmul.f32 %v748_v43, %v644_v62 }
 0x19a   : > { %2142 = vmatpush3.msra.mxu0 %v745_v45  ;;  %2152 = vmatpush3.msra.mxu1 %v771_v55  ;;  %v721_v22 = vpop.xlane.xlu0 %720 }
 0x19b   : > { %v757_v28 = vadd.f32 %v753_v1, %v721_v22  ;;  %2143 = vmatprep.subr.mxu0 %v744_v2  ;;  %2153 = vmatprep.subr.mxu1 %v770_v54 }
 0x19c   : > { %v712_v24 = vpop.xlane.xlu1 %711  ;;  %2144 = vmatpush3.msra.mxu0 %v744_v2  ;;  %2154 = vmatpush3.msra.mxu1 %v770_v54 }
 0x19d   : > { %v769_v35 = vadd.f32 %v765_v17, %v757_v28  ;;  %v756_v37 = vadd.f32 %v752_v23, %v712_v24  ;;  %2146 = vmatmul.mubr.msk.f32.vlgmr.msra.gmra.mxu0 %vm772_vm2, %v2588_v40 }
 0x19e   : > { %2148 = vmatprep.mubr.msk.f32.mxu0 %vm772_vm2, %v2591_v47 }
 0x19f   : > { %v768_v60 = vadd.f32 %v764_v20, %v756_v37  ;;  %2155 = vmatprep.subr.mxu1 %v769_v35  ;;  %v2332_v37 = vmov 1  }
 0x1a0   : > { %2156 = vmatpush3.msra.mxu1 %v769_v35  ;;  %2179 = vset.pattern.permute.xlu0 %v2332_v37 }
 0x1a1   : > { %2157 = vmatprep.subr.mxu1 %v768_v60  ;;  %2149 = vmatmul.mubr.msk.f32.gmra.mxu0 %vm772_vm2, %v2593_v48 }
 0x1a2   : > { %2158 = vmatpush3.msra.mxu1 %v768_v60  ;;  %2180 = vset.pattern.permute.xlu1 %v2332_v37 }
 0x1a3   : > { %2160 = vmatmul.mubr.msk.f32.vlgmr.msra.gmra.mxu1 %vm772_vm2, %v2588_v40 }
 0x1a4   : > { %2162 = vmatprep.mubr.msk.f32.mxu1 %vm772_vm2, %v2591_v47 }
 0x1a7   : > { %2163 = vmatmul.mubr.msk.f32.gmra.mxu1 %vm772_vm2, %v2593_v48 }
 0x25d   : > { %v2643_v27 = vpop.f32.mrf.mxu0 }
 0x25e   : > { %v956_v33 = vmul.f32 %v2643_v27, %v2643_v27 }
 0x25f   : > { %v2645_v29 = vpop.f32.mrf.mxu0 }
 0x260   : > { %v955_v42 = vmul.f32 %v2645_v29, %v2645_v29 }
 0x261   : > { %v2649_v34 = vpop.f32.mrf.mxu0 }
 0x262   : > { %v958_v47 = vmul.f32 %v2649_v34, %v2649_v34 }
 0x263   : > { %v2161_v38 = vpop.f32.mrf.mxu1  ;;  %v2655_v45 = vpop.f32.mrf.mxu0 }
 0x264   : > { %v960_v40 = vsub.f32 %v2161_v38, %v956_v33  ;;  %v957_v1 = vmul.f32 %v2655_v45, %v2655_v45  ;;  %v997_v37 = vsub.f32 %v2603_v52, %v2655_v45 }
 0x265   : > { %v936_v43 = vpop.f32.mrf.mxu1 }
 0x266   : > { %v964_v48 = vmax.f32 %v960_v40, 0.0  ;;  %v959_v55 = vsub.f32 %v936_v43, %v955_v42 }
 0x267   : > { %v2164_v56 = vpop.f32.mrf.mxu1 }
 0x268   : > { %v968_v57 = vadd.f32 1e-05, %v964_v48  ;;  %v963_v62 = vmax.f32 %v959_v55, 0.0  ;;  %v962_v54 = vsub.f32 %v2164_v56, %v958_v47 }
 0x269   : > { %v946_v2 = vpop.f32.mrf.mxu1 }
 0x26a   : > { %2185 = vrsqrt.f32 %v968_v57  ;;  %v967_v17 = vadd.f32 1e-05, %v963_v62  ;;  %v961_v22 = vsub.f32 %v946_v2, %v957_v1  ;;  %v966_v23 = vmax.f32 %v962_v54, 0.0 }
 0x26b   : > { %v996_v54 = vsub.f32 %v2612_v59, %v2643_v27 }
 0x26c   : > { %2187 = vrsqrt.f32 %v967_v17  ;;  %v965_v28 = vmax.f32 %v961_v22, 0.0  ;;  %v970_v24 = vadd.f32 1e-05, %v966_v23  ;;  %v995_v17 = vsub.f32 %v2621_v3, %v2645_v29 }
 0x26e   : > { %v969_v20 = vadd.f32 1e-05, %v965_v28 }
 0x270   : > { %2189 = vrsqrt.f32 %v969_v20 }
 0x271   : > { %2191 = vrsqrt.f32 %v970_v24 }
 0x277   : > { %v2186_v35 = vpop.eup %2185 }
 0x278   : > { %981 = vrot.lane.b32.xlu1 %v2186_v35, %s2331_s30 }
 0x279   : > { %v2188_v60 = vpop.eup %2187 }
 0x27a   : > { %979 = vrot.lane.b32.xlu0 %v2188_v60, %s2331_s30 }
 0x27d   : > { %v2190_v33 = vpop.eup %2189 }
 0x27e   : > { %983 = vrot.lane.b32.xlu1 %v2190_v33, %s2331_s30  ;;  %1023 = vrot.lane.b32.xlu0 %v2621_v3, %s2333_s4  ;;  %v2192_v38 = vpop.eup %2191 }
 0x282   : > { %985 = vrot.lane.b32.xlu1 %v2192_v38, %s2331_s30 }
 0x286   : > { %1025 = vrot.lane.b32.xlu1 %v2612_v59, %s2333_s4 }
 0x2ea   : > { %v982_v42 = vpop.permute.xlu1 %981 }
 0x2eb   : > { %v992_v40 = vmul.f32 %v982_v42, %v2612_v59  ;;  %v998_v59 = vsub.f32 %v2598_v50, %v2649_v34 }
 0x2ec   : > { %v980_v47 = vpop.permute.xlu0 %979 }
 0x2ed   : > { %v991_v43 = vmul.f32 %v980_v47, %v2621_v3  ;;  %1005 = vrot.lane.b32.xlu1 %v992_v40, %s2334_s5 }
 0x2ef   : > { %1003 = vrot.lane.b32.xlu0 %v991_v43, %s2334_s5 }
 0x2f0   : > { %v984_v48 = vpop.permute.xlu1 %983  ;;  %v1024_v1 = vpop.permute.xlu0 %1023 }
 0x2f1   : > { %v993_v55 = vmul.f32 %v984_v48, %v2603_v52 }
 0x2f3   : > { %1007 = vrot.lane.b32.xlu0 %v993_v55, %s2334_s5 }
 0x2f4   : > { %v986_v56 = vpop.permute.xlu1 %985 }
 0x2f5   : > { %v994_v57 = vmul.f32 %v986_v56, %v2598_v50 }
 0x2f7   : > { %1027 = vrot.lane.b32.xlu0 %v2603_v52, %s2333_s4  ;;  %1009 = vrot.lane.b32.xlu1 %v994_v57, %s2334_s5 }
 0x2f8   : > { %v1026_v62 = vpop.permute.xlu1 %1025 }
 0x2fb   : > { %1040 = vperm.xlu0 %2179, %v991_v43   ;;  %1029 = vrot.lane.b32.xlu1 %v2598_v50, %s2333_s4 }
 0x2ff   : > { %1052 = vperm.xlu0 %2179, %v994_v57   ;;  %1044 = vperm.xlu1 %2180, %v992_v40  }
 0x303   : > { %1048 = vperm.xlu1 %2180, %v993_v55   ;;  %2182 = vset.pattern.permute.xlu0 %v2329_v0 }
 0x307   : > { %2181 = vset.pattern.permute.xlu1 %v2329_v0 }
 0x35f   : > { %v1006_v2 = vpop.permute.xlu1 %1005 }
 0x360   : > { %v1016_v22 = vmul.f32 %v1006_v2, %v996_v54 }
 0x361   : > { %v1004_v23 = vpop.permute.xlu0 %1003 }
 0x362   : > { %v1036_v28 = vadd.f32 %v1026_v62, %v1016_v22  ;;  %v1015_v20 = vmul.f32 %v1004_v23, %v995_v17 }
 0x364   : > { %v1035_v24 = vadd.f32 %v1024_v1, %v1015_v20  ;;  %1094 = vperm.xlu0 %2182, %v1036_v28  }
 0x365   : > { %v1008_v35 = vpop.permute.xlu0 %1007 }
 0x366   : > { %1089 = vperm.xlu1 %2181, %v1035_v24   ;;  %v1017_v0 = vmul.f32 %v1008_v35, %v997_v37 }
 0x369   : > { %v1028_v60 = vpop.permute.xlu0 %1027  ;;  %v1010_v33 = vpop.permute.xlu1 %1009 }
 0x36a   : > { %v1037_v27 = vadd.f32 %v1028_v60, %v1017_v0  ;;  %v1018_v38 = vmul.f32 %v1010_v33, %v998_v59 }
 0x36c   : > { %1099 = vperm.xlu1 %2181, %v1037_v27  }
 0x36d   : > { %v1030_v3 = vpop.permute.xlu1 %1029 }
 0x36e   : > { %v1038_v29 = vadd.f32 %v1030_v3, %v1018_v38 }
 0x370   : > { %1104 = vperm.xlu1 %2181, %v1038_v29  }
 0x376   : > { %v1041_v42 = vpop.permute.xlu0 %1040 }
 0x377   : > { %v2713_v23 = vmul.f32 %v1041_v42, %v2427_v4  ;;  %v2723_v35 = vmul.f32 %v1041_v42, %v2431_v6  ;;  %v2729_v4 = vmul.f32 %v1041_v42, %v2429_v5  ;;  %v2735_v38 = vmul.f32 %v1041_v42, %v2433_v7 }
 0x37a   : > { %v2677_v40 = vpop.permute.xlu0 %1052  ;;  %v1045_v47 = vpop.permute.xlu1 %1044 }
 0x37b   : > { %3482 = vst [vmem:[#allocation14_spill] sm:$0xff] %v2677_v40  ;;  %v1063_v43 = vmul.f32 %v1045_v47, %v2435_v8  ;;  %v1064_v52 = vmul.f32 %v1045_v47, %v2439_v10  ;;  %v1065_v45 = vmul.f32 %v1045_v47, %v2437_v9  ;;  %v1066_v55 = vmul.f32 %v1045_v47, %v2441_v11 }
 0x37c   : > { %v1067_v50 = vmul.f32 %v1045_v47, %v2499_v46  ;;  %v1068_v34 = vmul.f32 %v1045_v47, %v2509_v53  ;;  %v1069_v56 = vmul.f32 %v1045_v47, %v2502_v49  ;;  %v1070_v57 = vmul.f32 %v1045_v47, %v2517_v58 }
 0x37d   : > { %v2739_v47 = vmul.f32 %v1041_v42, %v2476_v30 }
 0x3df   : > { %v1095_v48 = vpop.permute.xlu0 %1094 }
 0x3e0   : > { %v1115_v62 = vadd.f32 %v1095_v48, %v1063_v43  ;;  %v1116_v1 = vadd.f32 %v1095_v48, %v1064_v52  ;;  %v1117_v54 = vadd.f32 %v1095_v48, %v1065_v45  ;;  %v2687_v2 = vadd.f32 %v1095_v48, %v1066_v55 }
 0x3e1   : > { %v2689_v8 = vadd.f32 %v1095_v48, %v1067_v50  ;;  %v2691_v10 = vadd.f32 %v1095_v48, %v1068_v34  ;;  %v2693_v9 = vadd.f32 %v1095_v48, %v1069_v56  ;;  %v2695_v11 = vadd.f32 %v1095_v48, %v1070_v57 }
 0x3e2   : > { %v2697_v46 = vmul.f32 0.70710677, %v1115_v62  ;;  %v2699_v53 = vmul.f32 0.70710677, %v1116_v1  ;;  %v2701_v49 = vmul.f32 0.70710677, %v1117_v54  ;;  %v1060_v45 = vmul.f32 %v1041_v42, %v2488_v36 }
 0x3e3   : > { %v2704_v58 = vmul.f32 0.70710677, %v2687_v2  ;;  %v2707_v17 = vmul.f32 0.70710677, %v2689_v8  ;;  %v2710_v22 = vmul.f32 0.70710677, %v2691_v10  ;;  %v2743_v48 = vmul.f32 %v1041_v42, %v2480_v32 }
 0x3e4   : > { %v2716_v28 = vmul.f32 0.70710677, %v2693_v9  ;;  %v2719_v20 = vmul.f32 0.70710677, %v2695_v11  ;;  %v1211_v24 = vand.u32 2147483647, %v2697_v46  ;;  %v2746_v55 = vmul.f32 %v1041_v42, %v2496_v41  ;;  %v2752_v42 = vpop.permute.xlu1 %1048 }
 0x3e5   : > { %v1212_v37 = vand.u32 2147483647, %v2699_v53  ;;  %v1213_v0 = vand.u32 2147483647, %v2701_v49  ;;  %v1214_v60 = vand.u32 2147483647, %v2704_v58 }
 0x3e6   : > { %v1215_v33 = vand.u32 2147483647, %v2707_v17  ;;  %v1216_v59 = vand.u32 2147483647, %v2710_v22  ;;  %v1217_v27 = vand.u32 2147483647, %v2716_v28 }
 0x3e7   : > { %v1218_v6 = vand.u32 2147483647, %v2719_v20  ;;  %v1243_v3 = vmul.f32 0.3275911, %v1211_v24  ;;  %v1244_v29 = vmul.f32 0.3275911, %v1212_v37 }
 0x3e8   : > { %v1245_v43 = vmul.f32 0.3275911, %v1213_v0  ;;  %v1246_v52 = vmul.f32 0.3275911, %v1214_v60  ;;  %v1247_v5 = vmul.f32 0.3275911, %v1215_v33 }
 0x3e9   : > { %v1248_v7 = vmul.f32 0.3275911, %v1216_v59  ;;  %v1249_v50 = vmul.f32 0.3275911, %v1217_v27  ;;  %v1275_v34 = vadd.f32 1.0, %v1243_v3  ;;  %v1276_v56 = vadd.f32 1.0, %v1244_v29 }
 0x3ea   : > { %v1277_v57 = vadd.f32 1.0, %v1245_v43  ;;  %v2748_v61 = vmul.f32 0.5, %v1115_v62  ;;  %v1250_v30 = vmul.f32 0.3275911, %v1218_v6  ;;  %v1278_v44 = vadd.f32 1.0, %v1246_v52 }
 0x3eb   : > { %v1279_v51 = vadd.f32 1.0, %v1247_v5  ;;  %2193 = vrcp.f32 %v1275_v34  ;;  %v1627_v39 = vsub.f32 0.0, %v1211_v24  ;;  %v1628_v25 = vsub.f32 0.0, %v1212_v37 }
 0x3ec   : > { %v1629_v36 = vsub.f32 0.0, %v1213_v0  ;;  %v2750_v19 = vmul.f32 0.5, %v1116_v1  ;;  %v1280_v32 = vadd.f32 1.0, %v1248_v7  ;;  %2195 = vrcp.f32 %v1276_v56 }
 0x3ed   : > { %v1630_v41 = vsub.f32 0.0, %v1214_v60  ;;  %v1281_v21 = vadd.f32 1.0, %v1249_v50  ;;  %2197 = vrcp.f32 %v1277_v57  ;;  %v1631_v3 = vsub.f32 0.0, %v1215_v33 }
 0x3ee   : > { %v1659_v29 = vmul.f32 %v1627_v39, %v1211_v24  ;;  %v1282_v62 = vadd.f32 1.0, %v1250_v30  ;;  %2199 = vrcp.f32 %v1278_v44  ;;  %v1632_v43 = vsub.f32 0.0, %v1216_v59  ;;  %v1090_v44 = vpop.permute.xlu1 %1089 }
 0x3ef   : > { %v1660_v52 = vmul.f32 %v1628_v25, %v1212_v37  ;;  %v2754_v5 = vmul.f32 0.5, %v1117_v54  ;;  %2201 = vrcp.f32 %v1279_v51  ;;  %v1633_v34 = vsub.f32 0.0, %v1217_v27 }
 0x3f0   : > { %v1661_v40 = vmul.f32 %v1629_v36, %v1213_v0  ;;  %v2757_v1 = vmul.f32 0.5, %v2687_v2  ;;  %2203 = vrcp.f32 %v1280_v32  ;;  %v1634_v7 = vsub.f32 0.0, %v1218_v6 }
 0x3f1   : > { %v1662_v56 = vmul.f32 %v1630_v41, %v1214_v60  ;;  %v2760_v50 = vmul.f32 0.5, %v2689_v8  ;;  %2205 = vrcp.f32 %v1281_v21  ;;  %v1663_v39 = vmul.f32 %v1631_v3, %v1215_v33 }
 0x3f2   : > { %v1699_v24 = vmul.f32 1.442695, %v1659_v29  ;;  %v2763_v25 = vmul.f32 0.5, %v2691_v10  ;;  %2207 = vrcp.f32 %v1282_v62  ;;  %v1664_v51 = vmul.f32 %v1632_v43, %v1216_v59 }
 0x3f3   : > { %v1701_v54 = vmul.f32 1.442695, %v1660_v52  ;;  %v2766_v37 = vmul.f32 0.5, %v2693_v9  ;;  %v2769_v2 = vmul.f32 0.5, %v2695_v11  ;;  %v1665_v0 = vmul.f32 %v1633_v34, %v1217_v27 }
 0x3f4   : > { %v1703_v60 = vmul.f32 1.442695, %v1661_v40  ;;  %v1666_v8 = vmul.f32 %v1634_v7, %v1218_v6  ;;  %v1705_v57 = vmul.f32 1.442695, %v1662_v56  ;;  %v2772_v21 = vadd.f32 %v1090_v44, %v2713_v23 }
 0x3f5   : > { %v2775_v33 = vadd.f32 %v1090_v44, %v2723_v35  ;;  %2209 = vpow2.f32 %v1699_v24  ;;  %v1707_v10 = vmul.f32 1.442695, %v1663_v39  ;;  %v2778_v59 = vadd.f32 %v1090_v44, %v2729_v4 }
 0x3f6   : > { %3483 = vst [vmem:[#allocation15_spill] sm:$0xff] %v2772_v21  ;;  %v2781_v9 = vadd.f32 %v1090_v44, %v2735_v38  ;;  %2211 = vpow2.f32 %v1701_v54  ;;  %v1709_v11 = vmul.f32 1.442695, %v1664_v51  ;;  %v2784_v40 = vadd.f32 %v1090_v44, %v2739_v47 }
 0x3f7   : > { %3484 = vst [vmem:[#allocation16_spill] sm:$0xff] %v2775_v33  ;;  %3485 = vst [vmem:[#allocation17_spill] sm:$0xff] %v2778_v59  ;;  %v2786_v27 = vadd.f32 %v1090_v44, %v1060_v45  ;;  %2213 = vpow2.f32 %v1703_v60  ;;  %v1711_v23 = vmul.f32 1.442695, %v1665_v0  ;;  %v2789_v35 = vadd.f32 %v1090_v44, %v2743_v48 }
 0x3f8   : > { %3486 = vst [vmem:[#allocation18_spill] sm:$0xff] %v2781_v9  ;;  %3487 = vst [vmem:[#allocation19_spill] sm:$0xff] %v2784_v40  ;;  %v2792_v6 = vadd.f32 %v1090_v44, %v2746_v55  ;;  %v2794_v4 = vpop.eup %2193  ;;  %2215 = vpow2.f32 %v1705_v57  ;;  %v1713_v38 = vmul.f32 1.442695, %v1666_v8  ;;  %v2797_v30 = vmul.f32 0.70710677, %v2772_v21 }
 0x3f9   : > { %3488 = vst [vmem:[#allocation20_spill] sm:$0xff] %v2786_v27  ;;  %3489 = vst [vmem:[#allocation21_spill] sm:$0xff] %v2789_v35  ;;  %v2800_v47 = vmul.f32 0.70710677, %v2775_v33  ;;  %v2802_v45 = vpop.eup %2195  ;;  %v1339_v36 = vmul.f32 1.0614054, %v2794_v4  ;;  %2217 = vpow2.f32 %v1707_v10 }
 0x3fa   : > { %3490 = vst [vmem:[#allocation22_spill] sm:$0xff] %v2792_v6  ;;  %3491 = vst [vmem:[#allocation23_spill] sm:$0xff] %v2797_v30  ;;  %v2806_v48 = vmul.f32 0.70710677, %v2778_v59  ;;  %v2809_v55 = vmul.f32 0.70710677, %v2781_v9  ;;  %v2811_v32 = vpop.eup %2197  ;;  %2219 = vpow2.f32 %v1709_v11 }
 0x3fb   : > { %3492 = vst [vmem:[#allocation24_spill] sm:$0xff] %v2800_v47  ;;  %v1340_v41 = vmul.f32 1.0614054, %v2802_v45  ;;  %v2815_v3 = vmul.f32 0.70710677, %v2784_v40  ;;  %v2820_v62 = vpop.eup %2199  ;;  %2221 = vpow2.f32 %v1711_v23  ;;  %vm1819_vm6 = vcmp.ge.f32.partialorder %v2697_v46, 0.0 }
 0x3fc   : > { %v2818_v29 = vmul.f32 0.70710677, %v2786_v27  ;;  %v1341_v43 = vmul.f32 1.0614054, %v2811_v32  ;;  %v1371_v52 = vadd.f32 -1.4531521, %v1339_v36  ;;  %v2826_v7 = vpop.eup %2201  ;;  %2223 = vpow2.f32 %v1713_v38 }
 0x3fd   : > { %v2824_v34 = vmul.f32 0.70710677, %v2789_v35  ;;  %v1342_v56 = vmul.f32 1.0614054, %v2820_v62  ;;  %v1372_v39 = vadd.f32 -1.4531521, %v1340_v41  ;;  %v2832_v44 = vpop.eup %2203 }
 0x3fe   : > { %v2830_v24 = vmul.f32 0.70710677, %v2792_v6  ;;  %v1343_v51 = vmul.f32 1.0614054, %v2826_v7  ;;  %v1373_v54 = vadd.f32 -1.4531521, %v1341_v43  ;;  %v1403_v0 = vmul.f32 %v2794_v4, %v1371_v52  ;;  %v2839_v8 = vpop.eup %2205 }
 0x3ff   : > { %v2837_v60 = vand.u32 2147483647, %v2797_v30  ;;  %v1344_v57 = vmul.f32 1.0614054, %v2832_v44  ;;  %v1374_v10 = vadd.f32 -1.4531521, %v1342_v56  ;;  %v1404_v11 = vmul.f32 %v2802_v45, %v1372_v39  ;;  %v2846_v38 = vpop.eup %2207 }
 0x400   : > { %v2844_v23 = vand.u32 2147483647, %v2800_v47  ;;  %v1345_v36 = vmul.f32 1.0614054, %v2839_v8  ;;  %v1375_v41 = vadd.f32 -1.4531521, %v1343_v51  ;;  %v1405_v43 = vmul.f32 %v2811_v32, %v1373_v54 }
 0x401   : > { %v1435_v52 = vadd.f32 1.4214138, %v1403_v0  ;;  %v1346_v18 = vmul.f32 1.0614054, %v2846_v38  ;;  %v1376_v30 = vadd.f32 -1.4531521, %v1344_v57  ;;  %v1406_v6 = vmul.f32 %v2820_v62, %v1374_v10 }
 0x402   : > { %v1436_v35 = vadd.f32 1.4214138, %v1404_v11  ;;  %v1377_v56 = vadd.f32 -1.4531521, %v1345_v36  ;;  %v1407_v39 = vmul.f32 %v2826_v7, %v1375_v41  ;;  %v1437_v27 = vadd.f32 1.4214138, %v1405_v43  ;;  %v2210_v40 = vpop.eup %2209 }
 0x403   : > { %v1467_v47 = vmul.f32 %v2794_v4, %v1435_v52  ;;  %v1378_v9 = vadd.f32 -1.4531521, %v1346_v18  ;;  %v1408_v59 = vmul.f32 %v2832_v44, %v1376_v30  ;;  %v1438_v51 = vadd.f32 1.4214138, %v1406_v6  ;;  %v2212_v0 = vpop.eup %2211 }
 0x404   : > { %v1468_v54 = vmul.f32 %v2802_v45, %v1436_v35  ;;  %v1409_v33 = vmul.f32 %v2839_v8, %v1377_v56  ;;  %v1439_v57 = vadd.f32 1.4214138, %v1407_v39  ;;  %v1469_v10 = vmul.f32 %v2811_v32, %v1437_v27  ;;  %v2214_v36 = vpop.eup %2213 }
 0x405   : > { %v1499_v11 = vadd.f32 -0.28449672, %v1467_v47  ;;  %v1410_v41 = vmul.f32 %v2846_v38, %v1378_v9  ;;  %v1440_v43 = vadd.f32 1.4214138, %v1408_v59  ;;  %v1470_v52 = vmul.f32 %v2820_v62, %v1438_v51  ;;  %v2216_v18 = vpop.eup %2215 }
 0x406   : > { %v1500_v21 = vadd.f32 -0.28449672, %v1468_v54  ;;  %v1441_v31 = vadd.f32 1.4214138, %v1409_v33  ;;  %v1471_v6 = vmul.f32 %v2826_v7, %v1439_v57  ;;  %v1501_v30 = vadd.f32 -0.28449672, %v1469_v10  ;;  %v2218_v15 = vpop.eup %2217 }
 0x407   : > { %v1531_v35 = vmul.f32 %v2794_v4, %v1499_v11  ;;  %v1442_v56 = vadd.f32 1.4214138, %v1410_v41  ;;  %v1472_v39 = vmul.f32 %v2832_v44, %v1440_v43  ;;  %v1502_v27 = vadd.f32 -0.28449672, %v1470_v52  ;;  %v2220_v26 = vpop.eup %2219 }
 0x408   : > { %v1532_v47 = vmul.f32 %v2802_v45, %v1500_v21  ;;  %v1473_v59 = vmul.f32 %v2839_v8, %v1441_v31  ;;  %v1503_v9 = vadd.f32 -0.28449672, %v1471_v6  ;;  %v1533_v51 = vmul.f32 %v2811_v32, %v1501_v30  ;;  %v2222_v33 = vpop.eup %2221 }
 0x409   : > { %v1563_v54 = vadd.f32 0.2548296, %v1531_v35  ;;  %v1474_v57 = vmul.f32 %v2846_v38, %v1442_v56  ;;  %v1504_v10 = vadd.f32 -0.28449672, %v1472_v39  ;;  %v1534_v11 = vmul.f32 %v2820_v62, %v1502_v27  ;;  %v2224_v41 = vpop.eup %2223 }
 0x40a   : > { %v1564_v63 = vadd.f32 0.2548296, %v1532_v47  ;;  %v1505_v43 = vadd.f32 -0.28449672, %v1473_v59  ;;  %v1535_v21 = vmul.f32 %v2826_v7, %v1503_v9  ;;  %v1565_v52 = vadd.f32 0.2548296, %v1533_v51 }
 0x40b   : > { %v1595_v31 = vmul.f32 %v2794_v4, %v1563_v54  ;;  %vm1820_vm7 = vcmp.ge.f32.partialorder %v2699_v53, 0.0  ;;  %v1506_v6 = vadd.f32 -0.28449672, %v1474_v57  ;;  %v1536_v30 = vmul.f32 %v2832_v44, %v1504_v10 }
 0x40c   : > { %v1566_v35 = vadd.f32 0.2548296, %v1534_v11  ;;  %v1596_v56 = vmul.f32 %v2802_v45, %v1564_v63  ;;  %vm1821_vm8 = vcmp.ge.f32.partialorder %v2701_v49, 0.0  ;;  %v1537_v39 = vmul.f32 %v2839_v8, %v1505_v43 }
 0x40d   : > { %v1567_v27 = vadd.f32 0.2548296, %v1535_v21  ;;  %v1597_v47 = vmul.f32 %v2811_v32, %v1565_v52  ;;  %v1755_v59 = vmul.f32 %v2210_v40, %v1595_v31  ;;  %vm1822_vm9 = vcmp.ge.f32.partialorder %v2704_v58, 0.0 }
 0x40e   : > { %v1538_v4 = vmul.f32 %v2846_v38, %v1506_v6  ;;  %v1568_v9 = vadd.f32 0.2548296, %v1536_v30  ;;  %v1598_v51 = vmul.f32 %v2820_v62, %v1566_v35  ;;  %v1756_v54 = vmul.f32 %v2212_v0, %v1596_v56 }
 0x40f   : > { %vm1823_vm10 = vcmp.ge.f32.partialorder %v2707_v17, 0.0  ;;  %v1569_v57 = vadd.f32 0.2548296, %v1537_v39  ;;  %v1599_v63 = vmul.f32 %v2826_v7, %v1567_v27  ;;  %v1757_v45 = vmul.f32 %v2214_v36, %v1597_v47 }
 0x410   : > { %v1787_v10 = vsub.f32 1.0, %v1755_v59  ;;  %vm1824_vm11 = vcmp.ge.f32.partialorder %v2710_v22, 0.0  ;;  %v1570_v11 = vadd.f32 0.2548296, %v1538_v4  ;;  %v1600_v40 = vmul.f32 %v2832_v44, %v1568_v9 }
 0x411   : > { %v1758_v32 = vmul.f32 %v2216_v18, %v1598_v51  ;;  %v1788_v43 = vsub.f32 1.0, %v1756_v54  ;;  %vm1825_vm12 = vcmp.ge.f32.partialorder %v2716_v28, 0.0  ;;  %v1601_v21 = vmul.f32 %v2839_v8, %v1569_v57 }
 0x412   : > { %v1759_v62 = vmul.f32 %v2218_v15, %v1599_v63  ;;  %v1789_v0 = vsub.f32 1.0, %v1757_v45  ;;  %vm1826_vm13 = vcmp.ge.f32.partialorder %v2719_v20, 0.0  ;;  %v1851_v52 = vsub.f32 0.0, %v1787_v10 }
 0x413   : > { %v1602_v7 = vmul.f32 %v2846_v38, %v1570_v11  ;;  %v1760_v36 = vmul.f32 %v2220_v26, %v1600_v40  ;;  %v1790_v31 = vsub.f32 1.0, %v1758_v32  ;;  %v1852_v6 = vsub.f32 0.0, %v1788_v43 }
 0x414   : > { %v1761_v30 = vmul.f32 %v2222_v33, %v1601_v21  ;;  %v1791_v35 = vsub.f32 1.0, %v1759_v62  ;;  %v1853_v44 = vsub.f32 0.0, %v1789_v0  ;;  %v1883_v18 = vsel %vm1819_vm6, %v1787_v10, %v1851_v52 }
 0x415   : > { %v1762_v56 = vmul.f32 %v2224_v41, %v1602_v7  ;;  %v1792_v39 = vsub.f32 1.0, %v1760_v36  ;;  %v1854_v8 = vsub.f32 0.0, %v1790_v31  ;;  %v1884_v15 = vsel %vm1820_vm7, %v1788_v43, %v1852_v6 }
 0x416   : > { %v1793_v27 = vsub.f32 1.0, %v1761_v30  ;;  %v1855_v47 = vsub.f32 0.0, %v1791_v35  ;;  %v1885_v26 = vsel %vm1821_vm8, %v1789_v0, %v1853_v44  ;;  %v1915_v38 = vadd.f32 1.0, %v1883_v18 }
 0x417   : > { %v1794_v59 = vsub.f32 1.0, %v1762_v56  ;;  %v1856_v33 = vsub.f32 0.0, %v1792_v39  ;;  %v1886_v4 = vsel %vm1822_vm9, %v1790_v31, %v1854_v8  ;;  %v1916_v9 = vadd.f32 1.0, %v1884_v15  ;;  %v3493_v56 = vld [vmem:[#allocation6_spill] sm:$0xff] }
 0x418   : > { %v1857_v46 = vsub.f32 0.0, %v1793_v27  ;;  %v1887_v53 = vsel %vm1823_vm10, %v1791_v35, %v1855_v47  ;;  %v1917_v49 = vadd.f32 1.0, %v1885_v26  ;;  %v1918_v41 = vadd.f32 1.0, %v1886_v4 }
 0x419   : > { %v1858_v51 = vsub.f32 0.0, %v1794_v59  ;;  %v1888_v58 = vsel %vm1824_vm11, %v1792_v39, %v1856_v33  ;;  %v1919_v54 = vadd.f32 1.0, %v1887_v53  ;;  %v1947_v57 = vmul.f32 %v1915_v38, %v2748_v61 }
 0x41a   : > { %v1889_v63 = vsel %vm1825_vm12, %v1793_v27, %v1857_v46  ;;  %v1920_v45 = vadd.f32 1.0, %v1888_v58  ;;  %v1948_v17 = vmul.f32 %v1916_v9, %v2750_v19  ;;  %v1949_v10 = vmul.f32 %v1917_v49, %v2754_v5 }
 0x41b   : > { %v1890_v11 = vsel %vm1826_vm13, %v1794_v59, %v1858_v51  ;;  %v1921_v40 = vadd.f32 1.0, %v1889_v63  ;;  %v1950_v22 = vmul.f32 %v1918_v41, %v2757_v1  ;;  %v1951_v32 = vmul.f32 %v1919_v54, %v2760_v50  ;;  %1979 = vst [vmem:[%s2901_s8 + $0x40] sm:$0xff] %v1947_v57  ;;  %v3495_v41 = vld [vmem:[#allocation7_spill] sm:$0xff]  ;;  %v3496_v57 = vld [vmem:[#allocation9_spill] sm:$0xff] }
 0x41c   : > { %v1922_v61 = vadd.f32 1.0, %v1890_v11  ;;  %v1952_v28 = vmul.f32 %v1920_v45, %v2763_v25  ;;  %1980 = vst [vmem:[%s2901_s8 + $0x48] sm:$0xff] %v1948_v17  ;;  %1981 = vst [vmem:[%s2901_s8 + $0x50] sm:$0xff] %v1949_v10  ;;  %v1205_v19 = vand.u32 2147483647, %v2806_v48  ;;  %v1072_v31 = vmul.f32 %v2752_v42, %v2447_v14  ;;  %v3497_v10 = vld [vmem:[#allocation15_spill] sm:$0xff] }
 0x41d   : > { %v1206_v5 = vand.u32 2147483647, %v2809_v55  ;;  %v1953_v20 = vmul.f32 %v1921_v40, %v2766_v37  ;;  %1982 = vst [vmem:[%s2901_s8 + $0x58] sm:$0xff] %v1950_v22  ;;  %1983 = vst [vmem:[%s2901_s8 + $0x60] sm:$0xff] %v1951_v32  ;;  %v1207_v1 = vand.u32 2147483647, %v2815_v3  ;;  %v2935_v37 = vmul.f32 %v2752_v42, %v2443_v12 }
 0x41e   : > { %v1208_v50 = vand.u32 2147483647, %v2818_v29  ;;  %v1209_v43 = vand.u32 2147483647, %v2824_v34  ;;  %v1954_v25 = vmul.f32 %v1922_v61, %v2769_v2  ;;  %1984 = vst [vmem:[%s2901_s8 + $0x68] sm:$0xff] %v1952_v28  ;;  %v2942_v2 = vmul.f32 %v2752_v42, %v2445_v13  ;;  %v3498_v22 = vld [vmem:[#allocation16_spill] sm:$0xff] }
 0x41f   : > { %v1210_v21 = vand.u32 2147483647, %v2830_v24  ;;  %v1235_v62 = vmul.f32 0.3275911, %v2837_v60  ;;  %v1236_v0 = vmul.f32 0.3275911, %v2844_v23  ;;  %v2946_v6 = vmul.f32 %v2752_v42, %v2451_v16 }
 0x420   : > { %1985 = vst [vmem:[%s2901_s8 + $0x70] sm:$0xff] %v1953_v20  ;;  %v1237_v52 = vmul.f32 0.3275911, %v1205_v19  ;;  %v1238_v7 = vmul.f32 0.3275911, %v1206_v5  ;;  %1986 = vst [vmem:[%s2901_s8 + $0x78] sm:$0xff] %v1954_v25  ;;  %v1075_v39 = vmul.f32 %v2752_v42, %v3493_v56  ;;  %v1077_v51 = vmul.f32 %v2752_v42, %v3495_v41 }
 0x421   : > { %v1239_v36 = vmul.f32 0.3275911, %v1207_v1  ;;  %v1240_v30 = vmul.f32 0.3275911, %v1208_v50  ;;  %v1241_v35 = vmul.f32 0.3275911, %v1209_v43  ;;  %v1078_v63 = vmul.f32 %v2752_v42, %v3496_v57 }
 0x422   : > { %v1267_v12 = vadd.f32 1.0, %v1235_v62  ;;  %v1268_v44 = vadd.f32 1.0, %v1236_v0  ;;  %v1269_v18 = vadd.f32 1.0, %v1237_v52  ;;  %v1242_v8 = vmul.f32 0.3275911, %v1210_v21  ;;  %v3494_v16 = vld [vmem:[#allocation8_spill] sm:$0xff]  ;;  %v1100_v62 = vpop.permute.xlu1 %1099 }
 0x423   : > { %v1270_v15 = vadd.f32 1.0, %v1238_v7  ;;  %v1271_v14 = vadd.f32 1.0, %v1239_v36  ;;  %v1619_v13 = vsub.f32 0.0, %v2837_v60  ;;  %v1620_v27 = vsub.f32 0.0, %v2844_v23  ;;  %v3499_v28 = vld [vmem:[#allocation17_spill] sm:$0xff]  ;;  %v3500_v20 = vld [vmem:[#allocation18_spill] sm:$0xff] }
 0x424   : > { %2225 = vrcp.f32 %v1267_v12  ;;  %v1621_v47 = vsub.f32 0.0, %v1205_v19  ;;  %v1076_v26 = vmul.f32 %v2752_v42, %v3494_v16  ;;  %v1272_v38 = vadd.f32 1.0, %v1240_v30  ;;  %v3501_v0 = vld [vmem:[#allocation19_spill] sm:$0xff]  ;;  %v3504_v12 = vld [vmem:[#allocation22_spill] sm:$0xff] }
 0x425   : > { %2227 = vrcp.f32 %v1268_v44  ;;  %v1622_v59 = vsub.f32 0.0, %v1206_v5  ;;  %v1273_v33 = vadd.f32 1.0, %v1241_v35  ;;  %v1623_v4 = vsub.f32 0.0, %v1207_v1  ;;  %v3503_v35 = vld [vmem:[#allocation21_spill] sm:$0xff] }
 0x426   : > { %2229 = vrcp.f32 %v1269_v18  ;;  %v1651_v9 = vmul.f32 %v1619_v13, %v2837_v60  ;;  %v1274_v46 = vadd.f32 1.0, %v1242_v8  ;;  %v1624_v53 = vsub.f32 0.0, %v1208_v50 }
 0x427   : > { %2231 = vrcp.f32 %v1270_v15  ;;  %v1652_v49 = vmul.f32 %v1620_v27, %v2844_v23  ;;  %v1625_v58 = vsub.f32 0.0, %v1209_v43  ;;  %v1653_v54 = vmul.f32 %v1621_v47, %v1205_v19 }
 0x428   : > { %2233 = vrcp.f32 %v1271_v14  ;;  %v1626_v45 = vsub.f32 0.0, %v1210_v21  ;;  %v1654_v17 = vmul.f32 %v1622_v59, %v1206_v5  ;;  %v2962_v11 = vmul.f32 0.5, %v3497_v10 }
 0x429   : > { %2235 = vrcp.f32 %v1272_v38  ;;  %v1655_v60 = vmul.f32 %v1623_v4, %v1207_v1  ;;  %v1683_v40 = vmul.f32 1.442695, %v1651_v9  ;;  %v2965_v23 = vmul.f32 0.5, %v3498_v22  ;;  %v3502_v1 = vld [vmem:[#allocation20_spill] sm:$0xff] }
 0x42a   : > { %2237 = vrcp.f32 %v1273_v33  ;;  %v1656_v32 = vmul.f32 %v1624_v53, %v1208_v50  ;;  %v1685_v61 = vmul.f32 1.442695, %v1652_v49  ;;  %v2968_v19 = vmul.f32 0.5, %v3499_v28 }
 0x42b   : > { %2239 = vrcp.f32 %v1274_v46  ;;  %v2971_v42 = vmul.f32 0.5, %v3500_v20  ;;  %v1657_v25 = vmul.f32 %v1625_v58, %v1209_v43  ;;  %v1687_v5 = vmul.f32 1.442695, %v1653_v54 }
 0x42c   : > { %v2974_v52 = vmul.f32 0.5, %v3501_v0  ;;  %v2977_v7 = vmul.f32 0.5, %v3502_v1  ;;  %v1658_v36 = vmul.f32 %v1626_v45, %v1210_v21  ;;  %v1689_v30 = vmul.f32 1.442695, %v1654_v17 }
 0x42d   : > { %v2980_v50 = vmul.f32 0.5, %v3503_v35  ;;  %v2983_v44 = vmul.f32 0.5, %v3504_v12  ;;  %2241 = vpow2.f32 %v1683_v40  ;;  %v1691_v18 = vmul.f32 1.442695, %v1655_v60 }
 0x42e   : > { %2243 = vpow2.f32 %v1685_v61  ;;  %v1693_v43 = vmul.f32 1.442695, %v1656_v32  ;;  %v2986_v56 = vadd.f32 %v1100_v62, %v2935_v37  ;;  %v2988_v8 = vadd.f32 %v1100_v62, %v1072_v31 }
 0x42f   : > { %2245 = vpow2.f32 %v1687_v5  ;;  %v1695_v15 = vmul.f32 1.442695, %v1657_v25  ;;  %v2991_v21 = vadd.f32 %v1100_v62, %v2942_v2  ;;  %v2994_v14 = vadd.f32 %v1100_v62, %v2946_v6 }
 0x430   : > { %2247 = vpow2.f32 %v1689_v30  ;;  %v1697_v27 = vmul.f32 1.442695, %v1658_v36  ;;  %v2998_v47 = vadd.f32 %v1100_v62, %v1075_v39  ;;  %v3000_v16 = vadd.f32 %v1100_v62, %v1076_v26 }
 0x431   : > { %v2996_v13 = vpop.eup %2225  ;;  %2249 = vpow2.f32 %v1691_v18  ;;  %v3005_v38 = vadd.f32 %v1100_v62, %v1077_v51  ;;  %v3007_v2 = vadd.f32 %v1100_v62, %v1078_v63  ;;  %v3013_v33 = vmul.f32 0.70710677, %v2986_v56 }
 0x432   : > { %3505 = vst [vmem:[#allocation6_spill] sm:$0xff] %v3000_v16  ;;  %v3002_v37 = vpop.eup %2227  ;;  %v1331_v31 = vmul.f32 1.0614054, %v2996_v13  ;;  %2251 = vpow2.f32 %v1693_v43  ;;  %v3016_v39 = vmul.f32 0.70710677, %v2988_v8  ;;  %vm1813_vm0 = vcmp.ge.f32.partialorder %v2806_v48, 0.0 }
 0x433   : > { %v3009_v59 = vpop.eup %2229  ;;  %v1332_v6 = vmul.f32 1.0614054, %v3002_v37  ;;  %2253 = vpow2.f32 %v1695_v15  ;;  %v3022_v46 = vmul.f32 0.70710677, %v2991_v21  ;;  %v3028_v51 = vmul.f32 0.70710677, %v2994_v14 }
 0x434   : > { %v3018_v26 = vpop.eup %2231  ;;  %v1333_v4 = vmul.f32 1.0614054, %v3009_v59  ;;  %v1363_v9 = vadd.f32 -1.4531521, %v1331_v31  ;;  %2255 = vpow2.f32 %v1697_v27  ;;  %v3035_v45 = vmul.f32 0.70710677, %v2998_v47 }
 0x435   : > { %v3024_v53 = vpop.eup %2233  ;;  %v1334_v49 = vmul.f32 1.0614054, %v3018_v26  ;;  %v1364_v41 = vadd.f32 -1.4531521, %v1332_v6  ;;  %v3042_v22 = vmul.f32 0.70710677, %v3000_v16 }
 0x436   : > { %v3030_v58 = vpop.eup %2235  ;;  %v1335_v54 = vmul.f32 1.0614054, %v3024_v53  ;;  %v1365_v57 = vadd.f32 -1.4531521, %v1333_v4  ;;  %v1395_v63 = vmul.f32 %v2996_v13, %v1363_v9  ;;  %vm1814_vm1 = vcmp.ge.f32.partialorder %v2809_v55, 0.0 }
 0x437   : > { %v3037_v17 = vpop.eup %2237  ;;  %v1336_v10 = vmul.f32 1.0614054, %v3030_v58  ;;  %v1366_v60 = vadd.f32 -1.4531521, %v1334_v49  ;;  %v1396_v40 = vmul.f32 %v3002_v37, %v1364_v41  ;;  %vm1815_vm2 = vcmp.ge.f32.partialorder %v2815_v3, 0.0 }
 0x438   : > { %v3044_v32 = vpop.eup %2239  ;;  %v1337_v61 = vmul.f32 1.0614054, %v3037_v17  ;;  %v1367_v28 = vadd.f32 -1.4531521, %v1335_v54  ;;  %v1397_v20 = vmul.f32 %v3009_v59, %v1365_v57  ;;  %v1427_v25 = vadd.f32 1.4214138, %v1395_v63 }
 0x439   : > { %v1338_v5 = vmul.f32 1.0614054, %v3044_v32  ;;  %v1368_v62 = vadd.f32 -1.4531521, %v1336_v10  ;;  %v1398_v0 = vmul.f32 %v3018_v26, %v1366_v60  ;;  %v1428_v1 = vadd.f32 1.4214138, %v1396_v40 }
 0x43a   : > { %v1369_v36 = vadd.f32 -1.4531521, %v1337_v61  ;;  %v1399_v30 = vmul.f32 %v3024_v53, %v1367_v28  ;;  %v1429_v35 = vadd.f32 1.4214138, %v1397_v20  ;;  %v1459_v12 = vmul.f32 %v2996_v13, %v1427_v25  ;;  %v2242_v18 = vpop.eup %2241 }
 0x43b   : > { %v1370_v43 = vadd.f32 -1.4531521, %v1338_v5  ;;  %v1400_v15 = vmul.f32 %v3030_v58, %v1368_v62  ;;  %v1430_v27 = vadd.f32 1.4214138, %v1398_v0  ;;  %v1460_v31 = vmul.f32 %v3002_v37, %v1428_v1  ;;  %v2244_v6 = vpop.eup %2243 }
 0x43c   : > { %v1401_v4 = vmul.f32 %v3037_v17, %v1369_v36  ;;  %v1431_v9 = vadd.f32 1.4214138, %v1399_v30  ;;  %v1461_v49 = vmul.f32 %v3009_v59, %v1429_v35  ;;  %v1491_v41 = vadd.f32 -0.28449672, %v1459_v12  ;;  %v2246_v54 = vpop.eup %2245 }
 0x43d   : > { %v1402_v57 = vmul.f32 %v3044_v32, %v1370_v43  ;;  %v1432_v63 = vadd.f32 1.4214138, %v1400_v15  ;;  %v1462_v10 = vmul.f32 %v3018_v26, %v1430_v27  ;;  %v1492_v60 = vadd.f32 -0.28449672, %v1460_v31  ;;  %v2248_v40 = vpop.eup %2247 }
 0x43e   : > { %v1433_v61 = vadd.f32 1.4214138, %v1401_v4  ;;  %v1463_v28 = vmul.f32 %v3024_v53, %v1431_v9  ;;  %v1493_v20 = vadd.f32 -0.28449672, %v1461_v49  ;;  %v1523_v25 = vmul.f32 %v2996_v13, %v1491_v41  ;;  %v2250_v5 = vpop.eup %2249  ;;  %v3506_v41 = vld [vmem:[#allocation23_spill] sm:$0xff] }
 0x43f   : > { %v1434_v62 = vadd.f32 1.4214138, %v1402_v57  ;;  %v1464_v0 = vmul.f32 %v3030_v58, %v1432_v63  ;;  %v1494_v1 = vadd.f32 -0.28449672, %v1462_v10  ;;  %v1524_v36 = vmul.f32 %v3002_v37, %v1492_v60  ;;  %v2252_v30 = vpop.eup %2251 }
 0x440   : > { %v1465_v35 = vmul.f32 %v3037_v17, %v1433_v61  ;;  %v1495_v12 = vadd.f32 -0.28449672, %v1463_v28  ;;  %v1525_v43 = vmul.f32 %v3009_v59, %v1493_v20  ;;  %v1555_v15 = vadd.f32 0.2548296, %v1523_v25  ;;  %v2254_v27 = vpop.eup %2253  ;;  %v3507_v28 = vld [vmem:[#allocation24_spill] sm:$0xff] }
 0x441   : > { %v1466_v31 = vmul.f32 %v3044_v32, %v1434_v62  ;;  %v1496_v4 = vadd.f32 -0.28449672, %v1464_v0  ;;  %v1526_v9 = vmul.f32 %v3018_v26, %v1494_v1  ;;  %v1556_v49 = vadd.f32 0.2548296, %v1524_v36  ;;  %v2256_v57 = vpop.eup %2255 }
 0x442   : > { %vm1811_vm14 = vcmp.ge.f32.partialorder %v3506_v41, 0.0  ;;  %v1497_v63 = vadd.f32 -0.28449672, %v1465_v35  ;;  %v1527_v10 = vmul.f32 %v3024_v53, %v1495_v12  ;;  %v1557_v60 = vadd.f32 0.2548296, %v1525_v43 }
 0x443   : > { %v1587_v61 = vmul.f32 %v2996_v13, %v1555_v15  ;;  %vm1812_vm15 = vcmp.ge.f32.partialorder %v3507_v28, 0.0  ;;  %v1498_v20 = vadd.f32 -0.28449672, %v1466_v31  ;;  %v1528_v25 = vmul.f32 %v3030_v58, %v1496_v4 }
 0x444   : > { %v1558_v16 = vadd.f32 0.2548296, %v1526_v9  ;;  %v1588_v62 = vmul.f32 %v3002_v37, %v1556_v49  ;;  %v1529_v0 = vmul.f32 %v3037_v17, %v1497_v63  ;;  %v1559_v1 = vadd.f32 0.2548296, %v1527_v10 }
 0x445   : > { %v1589_v36 = vmul.f32 %v3009_v59, %v1557_v60  ;;  %v1747_v35 = vmul.f32 %v2242_v18, %v1587_v61  ;;  %v1530_v13 = vmul.f32 %v3044_v32, %v1498_v20  ;;  %v1560_v12 = vadd.f32 0.2548296, %v1528_v25 }
 0x446   : > { %v1590_v43 = vmul.f32 %v3018_v26, %v1558_v16  ;;  %v1748_v15 = vmul.f32 %v2244_v6, %v1588_v62  ;;  %v1561_v31 = vadd.f32 0.2548296, %v1529_v0  ;;  %v1591_v37 = vmul.f32 %v3024_v53, %v1559_v1 }
 0x447   : > { %v1749_v4 = vmul.f32 %v2246_v54, %v1589_v36  ;;  %v1779_v9 = vsub.f32 1.0, %v1747_v35  ;;  %vm1816_vm3 = vcmp.ge.f32.partialorder %v2818_v29, 0.0  ;;  %v1562_v49 = vadd.f32 0.2548296, %v1530_v13 }
 0x448   : > { %v1592_v59 = vmul.f32 %v3030_v58, %v1560_v12  ;;  %v1750_v18 = vmul.f32 %v2248_v40, %v1590_v43  ;;  %v1780_v63 = vsub.f32 1.0, %v1748_v15  ;;  %vm1817_vm4 = vcmp.ge.f32.partialorder %v2824_v34, 0.0 }
 0x449   : > { %v1593_v10 = vmul.f32 %v3037_v17, %v1561_v31  ;;  %v1751_v16 = vmul.f32 %v2250_v5, %v1591_v37  ;;  %v1781_v26 = vsub.f32 1.0, %v1749_v4  ;;  %vm1818_vm5 = vcmp.ge.f32.partialorder %v2830_v24, 0.0 }
 0x44a   : > { %v1843_v6 = vsub.f32 0.0, %v1779_v9  ;;  %v1594_v53 = vmul.f32 %v3044_v32, %v1562_v49  ;;  %v1752_v54 = vmul.f32 %v2252_v30, %v1592_v59  ;;  %v1782_v60 = vsub.f32 1.0, %v1750_v18 }
 0x44b   : > { %v1844_v61 = vsub.f32 0.0, %v1780_v63  ;;  %v1753_v20 = vmul.f32 %v2254_v27, %v1593_v10  ;;  %v1783_v25 = vsub.f32 1.0, %v1751_v16  ;;  %v1845_v62 = vsub.f32 0.0, %v1781_v26 }
 0x44c   : > { %v1875_v58 = vsel %vm1811_vm14, %v1779_v9, %v1843_v6  ;;  %v1754_v40 = vmul.f32 %v2256_v57, %v1594_v53  ;;  %v1784_v0 = vsub.f32 1.0, %v1752_v54  ;;  %v1846_v1 = vsub.f32 0.0, %v1782_v60  ;;  %v3508_v54 = vld [vmem:[#allocation2_spill] sm:$0xff] }
 0x44d   : > { %v1876_v17 = vsel %vm1812_vm15, %v1780_v63, %v1844_v61  ;;  %v1785_v5 = vsub.f32 1.0, %v1753_v20  ;;  %v1847_v36 = vsub.f32 0.0, %v1783_v25  ;;  %v1877_v32 = vsel %vm1813_vm0, %v1781_v26, %v1845_v62  ;;  %v3510_v62 = vld [vmem:[#allocation4_spill] sm:$0xff] }
 0x44e   : > { %v1907_v30 = vadd.f32 1.0, %v1875_v58  ;;  %v1786_v35 = vsub.f32 1.0, %v1754_v40  ;;  %v1848_v13 = vsub.f32 0.0, %v1784_v0  ;;  %v1878_v27 = vsel %vm1814_vm1, %v1782_v60, %v1846_v1  ;;  %v3509_v60 = vld [vmem:[#allocation14_spill] sm:$0xff] }
 0x44f   : > { %v1908_v12 = vadd.f32 1.0, %v1876_v17  ;;  %v1849_v41 = vsub.f32 0.0, %v1785_v5  ;;  %v1879_v57 = vsel %vm1815_vm2, %v1783_v25, %v1847_v36  ;;  %v1909_v43 = vadd.f32 1.0, %v1877_v32  ;;  %v3511_v17 = vld [vmem:[#allocation3_spill] sm:$0xff] }
 0x450   : > { %v1910_v28 = vadd.f32 1.0, %v1878_v27  ;;  %v1850_v15 = vsub.f32 0.0, %v1786_v35  ;;  %v1880_v48 = vsel %vm1816_vm3, %v1784_v0, %v1848_v13  ;;  %v1911_v31 = vadd.f32 1.0, %v1879_v57  ;;  %v3512_v27 = vld [vmem:[#allocation5_spill] sm:$0xff] }
 0x451   : > { %v1939_v37 = vmul.f32 %v1907_v30, %v2962_v11  ;;  %v1881_v55 = vsel %vm1817_vm4, %v1785_v5, %v1849_v41  ;;  %v1912_v4 = vadd.f32 1.0, %v1880_v48  ;;  %v1940_v3 = vmul.f32 %v1908_v12, %v2965_v23  ;;  %v3513_v41 = vld [vmem:[#allocation10_spill] sm:$0xff] }
 0x452   : > { %v1941_v9 = vmul.f32 %v1909_v43, %v2968_v19  ;;  %v1882_v49 = vsel %vm1818_vm5, %v1786_v35, %v1850_v15  ;;  %v1913_v59 = vadd.f32 1.0, %v1881_v55  ;;  %v1942_v29 = vmul.f32 %v1910_v28, %v2971_v42  ;;  %v3514_v43 = vld [vmem:[#allocation12_spill] sm:$0xff] }
 0x453   : > { %v1943_v18 = vmul.f32 %v1911_v31, %v2974_v52  ;;  %1971 = vst [vmem:[%s2901_s8] sm:$0xff] %v1939_v37  ;;  %v1914_v11 = vadd.f32 1.0, %v1882_v49  ;;  %v1944_v34 = vmul.f32 %v1912_v4, %v2977_v7  ;;  %1972 = vst [vmem:[%s2901_s8 + $0x8] sm:$0xff] %v1940_v3  ;;  %v3112_v23 = vmul.f32 0.70710677, %v3005_v38 }
 0x454   : > { %1973 = vst [vmem:[%s2901_s8 + $0x10] sm:$0xff] %v1941_v9  ;;  %v3115_v19 = vmul.f32 0.70710677, %v3007_v2  ;;  %v1945_v24 = vmul.f32 %v1913_v59, %v2980_v50  ;;  %1974 = vst [vmem:[%s2901_s8 + $0x18] sm:$0xff] %v1942_v29  ;;  %v1219_v42 = vand.u32 2147483647, %v3013_v33  ;;  %v3133_v61 = vmul.f32 %v3509_v60, %v3508_v54 }
 0x455   : > { %1975 = vst [vmem:[%s2901_s8 + $0x20] sm:$0xff] %v1943_v18  ;;  %v1220_v52 = vand.u32 2147483647, %v3016_v39  ;;  %v1221_v7 = vand.u32 2147483647, %v3022_v46  ;;  %v1946_v63 = vmul.f32 %v1914_v11, %v2983_v44  ;;  %1976 = vst [vmem:[%s2901_s8 + $0x28] sm:$0xff] %v1944_v34  ;;  %v1080_v58 = vmul.f32 %v3509_v60, %v3510_v62 }
 0x456   : > { %v1222_v10 = vand.u32 2147483647, %v3028_v51  ;;  %v1223_v16 = vand.u32 2147483647, %v3035_v45  ;;  %v1224_v26 = vand.u32 2147483647, %v3042_v22  ;;  %v1081_v5 = vmul.f32 %v3509_v60, %v3511_v17  ;;  %v1105_v17 = vpop.permute.xlu1 %1104 }
 0x457   : > { %1977 = vst [vmem:[%s2901_s8 + $0x30] sm:$0xff] %v1945_v24  ;;  %v1225_v50 = vand.u32 2147483647, %v3112_v23  ;;  %v1226_v6 = vand.u32 2147483647, %v3115_v19  ;;  %1978 = vst [vmem:[%s2901_s8 + $0x38] sm:$0xff] %v1946_v63  ;;  %v1082_v12 = vmul.f32 %v3509_v60, %v3512_v27  ;;  %v1083_v57 = vmul.f32 %v3509_v60, %v3513_v41 }
 0x458   : > { %v1251_v53 = vmul.f32 0.3275911, %v1219_v42  ;;  %v1252_v20 = vmul.f32 0.3275911, %v1220_v52  ;;  %v1253_v44 = vmul.f32 0.3275911, %v1221_v7  ;;  %v1084_v28 = vmul.f32 %v3509_v60, %v3514_v43 }
 0x459   : > { %v1254_v25 = vmul.f32 0.3275911, %v1222_v10  ;;  %v1255_v40 = vmul.f32 0.3275911, %v1223_v16  ;;  %v1256_v0 = vmul.f32 0.3275911, %v1224_v26  ;;  %v3185_v27 = vadd.f32 %v1105_v17, %v1083_v57 }
 0x45a   : > { %v1257_v1 = vmul.f32 0.3275911, %v1225_v50  ;;  %v1258_v36 = vmul.f32 0.3275911, %v1226_v6  ;;  %v1283_v32 = vadd.f32 1.0, %v1251_v53  ;;  %v1284_v30 = vadd.f32 1.0, %v1252_v20 }
 0x45b   : > { %v1285_v35 = vadd.f32 1.0, %v1253_v44  ;;  %v1286_v13 = vadd.f32 1.0, %v1254_v25  ;;  %v1287_v15 = vadd.f32 1.0, %v1255_v40  ;;  %v1635_v48 = vsub.f32 0.0, %v1219_v42  ;;  %v3515_v24 = vld [vmem:[#allocation11_spill] sm:$0xff]  ;;  %v3516_v20 = vld [vmem:[#allocation13_spill] sm:$0xff] }
 0x45c   : > { %2257 = vrcp.f32 %v1283_v32  ;;  %v1636_v31 = vsub.f32 0.0, %v1220_v52  ;;  %v1288_v37 = vadd.f32 1.0, %v1256_v0  ;;  %v1637_v55 = vsub.f32 0.0, %v1221_v7 }
 0x45d   : > { %2259 = vrcp.f32 %v1284_v30  ;;  %v1638_v4 = vsub.f32 0.0, %v1222_v10  ;;  %v1289_v3 = vadd.f32 1.0, %v1257_v1  ;;  %v1290_v9 = vadd.f32 1.0, %v1258_v36 }
 0x45e   : > { %2261 = vrcp.f32 %v1285_v35  ;;  %v1639_v49 = vsub.f32 0.0, %v1223_v16  ;;  %v1640_v59 = vsub.f32 0.0, %v1224_v26  ;;  %v1667_v29 = vmul.f32 %v1635_v48, %v1219_v42 }
 0x45f   : > { %2263 = vrcp.f32 %v1286_v13  ;;  %v1668_v18 = vmul.f32 %v1636_v31, %v1220_v52  ;;  %v1641_v11 = vsub.f32 0.0, %v1225_v50  ;;  %v1669_v34 = vmul.f32 %v1637_v55, %v1221_v7 }
 0x460   : > { %2265 = vrcp.f32 %v1287_v15  ;;  %v1085_v63 = vmul.f32 %v3509_v60, %v3515_v24  ;;  %v1642_v53 = vsub.f32 0.0, %v1226_v6  ;;  %v1670_v54 = vmul.f32 %v1638_v4, %v1222_v10 }
 0x461   : > { %2267 = vrcp.f32 %v1288_v37  ;;  %v1086_v44 = vmul.f32 %v3509_v60, %v3516_v20  ;;  %v3151_v25 = vmul.f32 0.5, %v2986_v56  ;;  %v1671_v62 = vmul.f32 %v1639_v49, %v1223_v16  ;;  %v3517_v16 = vld [vmem:[#allocation6_spill] sm:$0xff] }
 0x462   : > { %2269 = vrcp.f32 %v1289_v3  ;;  %v1715_v40 = vmul.f32 1.442695, %v1667_v29  ;;  %v3154_v42 = vmul.f32 0.5, %v2988_v8  ;;  %v1672_v52 = vmul.f32 %v1640_v59, %v1224_v26 }
 0x463   : > { %2271 = vrcp.f32 %v1290_v9  ;;  %v1717_v7 = vmul.f32 1.442695, %v1668_v18  ;;  %v3157_v0 = vmul.f32 0.5, %v2991_v21  ;;  %v3160_v10 = vmul.f32 0.5, %v2994_v14 }
 0x464   : > { %v1673_v1 = vmul.f32 %v1641_v11, %v1225_v50  ;;  %v1719_v60 = vmul.f32 1.442695, %v1669_v34  ;;  %v3163_v56 = vmul.f32 0.5, %v2998_v47  ;;  %v3166_v36 = vmul.f32 0.5, %v3517_v16 }
 0x465   : > { %v1674_v8 = vmul.f32 %v1642_v53, %v1226_v6  ;;  %v1721_v32 = vmul.f32 1.442695, %v1670_v54  ;;  %v3169_v26 = vmul.f32 0.5, %v3005_v38  ;;  %v3172_v21 = vmul.f32 0.5, %v3007_v2 }
 0x466   : > { %2273 = vpow2.f32 %v1715_v40  ;;  %v1723_v14 = vmul.f32 1.442695, %v1671_v62  ;;  %v1725_v50 = vmul.f32 1.442695, %v1672_v52  ;;  %v3175_v30 = vadd.f32 %v1105_v17, %v3133_v61 }
 0x467   : > { %2275 = vpow2.f32 %v1717_v7  ;;  %v3177_v47 = vadd.f32 %v1105_v17, %v1080_v58  ;;  %v1727_v35 = vmul.f32 1.442695, %v1673_v1  ;;  %v3179_v13 = vadd.f32 %v1105_v17, %v1081_v5 }
 0x468   : > { %2277 = vpow2.f32 %v1719_v60  ;;  %v3181_v6 = vadd.f32 %v1105_v17, %v1082_v12  ;;  %v1729_v2 = vmul.f32 1.442695, %v1674_v8  ;;  %v3187_v41 = vadd.f32 %v1105_v17, %v1084_v28 }
 0x469   : > { %v3183_v38 = vpop.eup %2257  ;;  %2279 = vpow2.f32 %v1721_v32  ;;  %v3192_v58 = vadd.f32 %v1105_v17, %v1085_v63  ;;  %v3194_v15 = vadd.f32 %v1105_v17, %v1086_v44  ;;  %v3200_v48 = vmul.f32 0.70710677, %v3175_v30 }
 0x46a   : > { %3518 = vst [vmem:[#allocation8_spill] sm:$0xff] %v3187_v41  ;;  %v3189_v43 = vpop.eup %2259  ;;  %v1347_v61 = vmul.f32 1.0614054, %v3183_v38  ;;  %2281 = vpow2.f32 %v1723_v14  ;;  %v3203_v57 = vmul.f32 0.70710677, %v3177_v47  ;;  %vm1827_vm6 = vcmp.ge.f32.partialorder %v3013_v33, 0.0 }
 0x46b   : > { %v3196_v5 = vpop.eup %2261  ;;  %v1348_v12 = vmul.f32 1.0614054, %v3189_v43  ;;  %2283 = vpow2.f32 %v1725_v50  ;;  %v3209_v55 = vmul.f32 0.70710677, %v3179_v13  ;;  %v3215_v49 = vmul.f32 0.70710677, %v3181_v6 }
 0x46c   : > { %v3205_v28 = vpop.eup %2263  ;;  %v1349_v31 = vmul.f32 1.0614054, %v3196_v5  ;;  %v1379_v37 = vadd.f32 -1.4531521, %v1347_v61  ;;  %2285 = vpow2.f32 %v1727_v35  ;;  %v3222_v34 = vmul.f32 0.70710677, %v3185_v27 }
 0x46d   : > { %v3211_v4 = vpop.eup %2265  ;;  %v1350_v3 = vmul.f32 1.0614054, %v3205_v28  ;;  %v1380_v9 = vadd.f32 -1.4531521, %v1348_v12  ;;  %2287 = vpow2.f32 %v1729_v2  ;;  %v3229_v20 = vmul.f32 0.70710677, %v3187_v41 }
 0x46e   : > { %v3217_v59 = vpop.eup %2267  ;;  %v1351_v29 = vmul.f32 1.0614054, %v3211_v4  ;;  %v1381_v18 = vadd.f32 -1.4531521, %v1349_v31  ;;  %v1411_v11 = vmul.f32 %v3183_v38, %v1379_v37  ;;  %vm1828_vm7 = vcmp.ge.f32.partialorder %v3016_v39, 0.0 }
 0x46f   : > { %v3224_v24 = vpop.eup %2269  ;;  %v1352_v63 = vmul.f32 1.0614054, %v3217_v59  ;;  %v1382_v53 = vadd.f32 -1.4531521, %v1350_v3  ;;  %v1412_v54 = vmul.f32 %v3189_v43, %v1380_v9  ;;  %vm1829_vm8 = vcmp.ge.f32.partialorder %v3022_v46, 0.0 }
 0x470   : > { %v3231_v44 = vpop.eup %2271  ;;  %v1353_v62 = vmul.f32 1.0614054, %v3224_v24  ;;  %v1383_v40 = vadd.f32 -1.4531521, %v1351_v29  ;;  %v1413_v52 = vmul.f32 %v3196_v5, %v1381_v18  ;;  %v1443_v7 = vadd.f32 1.4214138, %v1411_v11 }
 0x471   : > { %v1354_v1 = vmul.f32 1.0614054, %v3231_v44  ;;  %v1384_v60 = vadd.f32 -1.4531521, %v1352_v63  ;;  %v1414_v17 = vmul.f32 %v3205_v28, %v1382_v53  ;;  %v1444_v16 = vadd.f32 1.4214138, %v1412_v54 }
 0x472   : > { %v1385_v8 = vadd.f32 -1.4531521, %v1353_v62  ;;  %v1415_v32 = vmul.f32 %v3211_v4, %v1383_v40  ;;  %v1445_v14 = vadd.f32 1.4214138, %v1413_v52  ;;  %v1475_v50 = vmul.f32 %v3183_v38, %v1443_v7 }
 0x473   : > { %v2274_v35 = vpop.eup %2273  ;;  %v1386_v2 = vadd.f32 -1.4531521, %v1354_v1  ;;  %v1416_v61 = vmul.f32 %v3217_v59, %v1384_v60  ;;  %v1446_v12 = vadd.f32 1.4214138, %v1414_v17  ;;  %v1476_v31 = vmul.f32 %v3189_v43, %v1444_v16 }
 0x474   : > { %v2276_v37 = vpop.eup %2275  ;;  %v1417_v3 = vmul.f32 %v3224_v24, %v1385_v8  ;;  %v1447_v9 = vadd.f32 1.4214138, %v1415_v32  ;;  %v1477_v29 = vmul.f32 %v3196_v5, %v1445_v14  ;;  %v1507_v18 = vadd.f32 -0.28449672, %v1475_v50 }
 0x475   : > { %v2278_v11 = vpop.eup %2277  ;;  %v1418_v63 = vmul.f32 %v3231_v44, %v1386_v2  ;;  %v1448_v53 = vadd.f32 1.4214138, %v1416_v61  ;;  %v1478_v54 = vmul.f32 %v3205_v28, %v1446_v12  ;;  %v1508_v62 = vadd.f32 -0.28449672, %v1476_v31 }
 0x476   : > { %v2280_v40 = vpop.eup %2279  ;;  %v1449_v52 = vadd.f32 1.4214138, %v1417_v3  ;;  %v1479_v7 = vmul.f32 %v3211_v4, %v1447_v9  ;;  %v1509_v1 = vadd.f32 -0.28449672, %v1477_v29  ;;  %v1539_v60 = vmul.f32 %v3183_v38, %v1507_v18 }
 0x477   : > { %v2282_v17 = vpop.eup %2281  ;;  %v1450_v16 = vadd.f32 1.4214138, %v1418_v63  ;;  %v1480_v8 = vmul.f32 %v3217_v59, %v1448_v53  ;;  %v1510_v32 = vadd.f32 -0.28449672, %v1478_v54  ;;  %v1540_v14 = vmul.f32 %v3189_v43, %v1508_v62 }
 0x478   : > { %v2284_v50 = vpop.eup %2283  ;;  %v1481_v2 = vmul.f32 %v3224_v24, %v1449_v52  ;;  %v1511_v61 = vadd.f32 -0.28449672, %v1479_v7  ;;  %v1541_v12 = vmul.f32 %v3196_v5, %v1509_v1  ;;  %v1571_v31 = vadd.f32 0.2548296, %v1539_v60 }
 0x479   : > { %v2286_v3 = vpop.eup %2285  ;;  %v1482_v9 = vmul.f32 %v3231_v44, %v1450_v16  ;;  %v1512_v29 = vadd.f32 -0.28449672, %v1480_v8  ;;  %v1542_v18 = vmul.f32 %v3205_v28, %v1510_v32  ;;  %v1572_v41 = vadd.f32 0.2548296, %v1540_v14 }
 0x47a   : > { %v2288_v63 = vpop.eup %2287  ;;  %v1513_v53 = vadd.f32 -0.28449672, %v1481_v2  ;;  %v1543_v54 = vmul.f32 %v3211_v4, %v1511_v61  ;;  %v1573_v62 = vadd.f32 0.2548296, %v1541_v12  ;;  %v1603_v52 = vmul.f32 %v3183_v38, %v1571_v31 }
 0x47b   : > { %v1514_v7 = vadd.f32 -0.28449672, %v1482_v9  ;;  %v1544_v1 = vmul.f32 %v3217_v59, %v1512_v29  ;;  %v1574_v60 = vadd.f32 0.2548296, %v1542_v18  ;;  %v1604_v16 = vmul.f32 %v3189_v43, %v1572_v41 }
 0x47c   : > { %v1545_v8 = vmul.f32 %v3224_v24, %v1513_v53  ;;  %v1575_v32 = vadd.f32 0.2548296, %v1543_v54  ;;  %v1605_v14 = vmul.f32 %v3196_v5, %v1573_v62  ;;  %v1763_v2 = vmul.f32 %v2274_v35, %v1603_v52 }
 0x47d   : > { %vm1830_vm9 = vcmp.ge.f32.partialorder %v3028_v51, 0.0  ;;  %v1546_v38 = vmul.f32 %v3231_v44, %v1514_v7  ;;  %v1576_v61 = vadd.f32 0.2548296, %v1544_v1  ;;  %v1606_v12 = vmul.f32 %v3205_v28, %v1574_v60 }
 0x47e   : > { %v1764_v31 = vmul.f32 %v2276_v37, %v1604_v16  ;;  %vm1831_vm10 = vcmp.ge.f32.partialorder %v3035_v45, 0.0  ;;  %v1577_v9 = vadd.f32 0.2548296, %v1545_v8  ;;  %v1607_v41 = vmul.f32 %v3211_v4, %v1575_v32 }
 0x47f   : > { %v1765_v43 = vmul.f32 %v2278_v11, %v1605_v14  ;;  %v1795_v29 = vsub.f32 1.0, %v1763_v2  ;;  %vm1832_vm11 = vcmp.ge.f32.partialorder %v3042_v22, 0.0  ;;  %v1578_v18 = vadd.f32 0.2548296, %v1546_v38 }
 0x480   : > { %v1608_v5 = vmul.f32 %v3217_v59, %v1576_v61  ;;  %v1766_v35 = vmul.f32 %v2280_v40, %v1606_v12  ;;  %v1796_v53 = vsub.f32 1.0, %v1764_v31  ;;  %vm1833_vm12 = vcmp.ge.f32.partialorder %v3112_v23, 0.0 }
 0x481   : > { %v1609_v54 = vmul.f32 %v3224_v24, %v1577_v9  ;;  %v1767_v28 = vmul.f32 %v2282_v17, %v1607_v41  ;;  %v1797_v37 = vsub.f32 1.0, %v1765_v43  ;;  %vm1834_vm13 = vcmp.ge.f32.partialorder %v3115_v19, 0.0 }
 0x482   : > { %v1859_v62 = vsub.f32 0.0, %v1795_v29  ;;  %v1610_v4 = vmul.f32 %v3231_v44, %v1578_v18  ;;  %v1768_v11 = vmul.f32 %v2284_v50, %v1608_v5  ;;  %v1798_v52 = vsub.f32 1.0, %v1766_v35 }
 0x483   : > { %v1860_v7 = vsub.f32 0.0, %v1796_v53  ;;  %v1769_v1 = vmul.f32 %v2286_v3, %v1609_v54  ;;  %v1799_v60 = vsub.f32 1.0, %v1767_v28  ;;  %v1861_v16 = vsub.f32 0.0, %v1797_v37 }
 0x484   : > { %v1891_v59 = vsel %vm1827_vm6, %v1795_v29, %v1859_v62  ;;  %v1770_v40 = vmul.f32 %v2288_v63, %v1610_v4  ;;  %v1800_v8 = vsub.f32 1.0, %v1768_v11  ;;  %v1862_v32 = vsub.f32 0.0, %v1798_v52 }
 0x485   : > { %v1892_v24 = vsel %vm1828_vm7, %v1796_v53, %v1860_v7  ;;  %v1801_v17 = vsub.f32 1.0, %v1769_v1  ;;  %v1863_v14 = vsub.f32 0.0, %v1799_v60  ;;  %v1893_v44 = vsel %vm1829_vm8, %v1797_v37, %v1861_v16 }
 0x486   : > { %v1923_v50 = vadd.f32 1.0, %v1891_v59  ;;  %v1802_v2 = vsub.f32 1.0, %v1770_v40  ;;  %v1864_v38 = vsub.f32 0.0, %v1800_v8  ;;  %v1894_v3 = vsel %vm1830_vm9, %v1798_v52, %v1862_v32 }
 0x487   : > { %v1924_v61 = vadd.f32 1.0, %v1892_v24  ;;  %v1865_v33 = vsub.f32 0.0, %v1801_v17  ;;  %v1895_v63 = vsel %vm1831_vm10, %v1799_v60, %v1863_v14  ;;  %v1925_v12 = vadd.f32 1.0, %v1893_v44 }
 0x488   : > { %v1926_v39 = vadd.f32 1.0, %v1894_v3  ;;  %v1866_v31 = vsub.f32 0.0, %v1802_v2  ;;  %v1896_v46 = vsel %vm1832_vm11, %v1800_v8, %v1864_v38  ;;  %v1927_v9 = vadd.f32 1.0, %v1895_v63 }
 0x489   : > { %v1955_v41 = vmul.f32 %v1923_v50, %v3151_v25  ;;  %v1897_v51 = vsel %vm1833_vm12, %v1801_v17, %v1865_v33  ;;  %v1928_v43 = vadd.f32 1.0, %v1896_v46  ;;  %v1956_v45 = vmul.f32 %v1924_v61, %v3154_v42 }
 0x48a   : > { %v1957_v29 = vmul.f32 %v1925_v12, %v3157_v0  ;;  %v1898_v18 = vsel %vm1834_vm13, %v1802_v2, %v1866_v31  ;;  %v1929_v5 = vadd.f32 1.0, %v1897_v51  ;;  %v1958_v22 = vmul.f32 %v1926_v39, %v3160_v10 }
 0x48b   : > { %v1959_v35 = vmul.f32 %v1927_v9, %v3163_v56  ;;  %1987 = vst [vmem:[%s2901_s8 + $0x80] sm:$0xff] %v1955_v41  ;;  %v1930_v25 = vadd.f32 1.0, %v1898_v18  ;;  %v1960_v23 = vmul.f32 %v1928_v43, %v3166_v36  ;;  %1988 = vst [vmem:[%s2901_s8 + $0x88] sm:$0xff] %v1956_v45  ;;  %v3299_v42 = vmul.f32 0.70710677, %v3192_v58 }
 0x48c   : > { %1989 = vst [vmem:[%s2901_s8 + $0x90] sm:$0xff] %v1957_v29  ;;  %v3302_v0 = vmul.f32 0.70710677, %v3194_v15  ;;  %v1961_v19 = vmul.f32 %v1929_v5, %v3169_v26  ;;  %1990 = vst [vmem:[%s2901_s8 + $0x98] sm:$0xff] %v1958_v22  ;;  %v1227_v10 = vand.u32 2147483647, %v3200_v48 }
 0x48d   : > { %1991 = vst [vmem:[%s2901_s8 + $0xa0] sm:$0xff] %v1959_v35  ;;  %v1228_v56 = vand.u32 2147483647, %v3203_v57  ;;  %v1229_v36 = vand.u32 2147483647, %v3209_v55  ;;  %v1962_v53 = vmul.f32 %v1930_v25, %v3172_v21  ;;  %1992 = vst [vmem:[%s2901_s8 + $0xa8] sm:$0xff] %v1960_v23 }
 0x48e   : > { %v1230_v54 = vand.u32 2147483647, %v3215_v49  ;;  %v1231_v28 = vand.u32 2147483647, %v3222_v34  ;;  %v1232_v37 = vand.u32 2147483647, %v3229_v20 }
 0x48f   : > { %1993 = vst [vmem:[%s2901_s8 + $0xb0] sm:$0xff] %v1961_v19  ;;  %v1233_v26 = vand.u32 2147483647, %v3299_v42  ;;  %v1234_v62 = vand.u32 2147483647, %v3302_v0  ;;  %1994 = vst [vmem:[%s2901_s8 + $0xb8] sm:$0xff] %v1962_v53 }
 0x490   : > { %v1259_v4 = vmul.f32 0.3275911, %v1227_v10  ;;  %v1260_v11 = vmul.f32 0.3275911, %v1228_v56  ;;  %v1261_v52 = vmul.f32 0.3275911, %v1229_v36 }
 0x491   : > { %v1262_v7 = vmul.f32 0.3275911, %v1230_v54  ;;  %v1263_v1 = vmul.f32 0.3275911, %v1231_v28  ;;  %v1264_v60 = vmul.f32 0.3275911, %v1232_v37 }
 0x492   : > { %v1265_v21 = vmul.f32 0.3275911, %v1233_v26  ;;  %v1291_v16 = vadd.f32 1.0, %v1259_v4  ;;  %v1292_v59 = vadd.f32 1.0, %v1260_v11  ;;  %v1293_v40 = vadd.f32 1.0, %v1261_v52 }
 0x493   : > { %v1266_v8 = vmul.f32 0.3275911, %v1234_v62  ;;  %v1294_v32 = vadd.f32 1.0, %v1262_v7  ;;  %v1295_v24 = vadd.f32 1.0, %v1263_v1  ;;  %v1643_v17 = vsub.f32 0.0, %v1227_v10 }
 0x494   : > { %2289 = vrcp.f32 %v1291_v16  ;;  %v1296_v14 = vadd.f32 1.0, %v1264_v60  ;;  %v1644_v44 = vsub.f32 0.0, %v1228_v56  ;;  %v1297_v50 = vadd.f32 1.0, %v1265_v21 }
 0x495   : > { %2291 = vrcp.f32 %v1292_v59  ;;  %v1645_v2 = vsub.f32 0.0, %v1229_v36  ;;  %v1298_v38 = vadd.f32 1.0, %v1266_v8  ;;  %v1646_v3 = vsub.f32 0.0, %v1230_v54 }
 0x496   : > { %2293 = vrcp.f32 %v1293_v40  ;;  %v1647_v61 = vsub.f32 0.0, %v1231_v28  ;;  %v1675_v33 = vmul.f32 %v1643_v17, %v1227_v10  ;;  %v1648_v63 = vsub.f32 0.0, %v1232_v37 }
 0x497   : > { %2295 = vrcp.f32 %v1294_v32  ;;  %v1676_v12 = vmul.f32 %v1644_v44, %v1228_v56  ;;  %v1649_v39 = vsub.f32 0.0, %v1233_v26  ;;  %v1677_v31 = vmul.f32 %v1645_v2, %v1229_v36 }
 0x498   : > { %2297 = vrcp.f32 %v1295_v24  ;;  %v1650_v46 = vsub.f32 0.0, %v1234_v62  ;;  %v1678_v9 = vmul.f32 %v1646_v3, %v1230_v54  ;;  %v1679_v41 = vmul.f32 %v1647_v61, %v1231_v28 }
 0x499   : > { %2299 = vrcp.f32 %v1296_v14  ;;  %v1731_v51 = vmul.f32 1.442695, %v1675_v33  ;;  %v1680_v43 = vmul.f32 %v1648_v63, %v1232_v37  ;;  %v1733_v45 = vmul.f32 1.442695, %v1676_v12 }
 0x49a   : > { %2301 = vrcp.f32 %v1297_v50  ;;  %v1681_v29 = vmul.f32 %v1649_v39, %v1233_v26  ;;  %v1735_v18 = vmul.f32 1.442695, %v1677_v31  ;;  %v1682_v5 = vmul.f32 %v1650_v46, %v1234_v62  ;;  %v3519_v62 = vld [vmem:[#allocation8_spill] sm:$0xff] }
 0x49b   : > { %2303 = vrcp.f32 %v1298_v38  ;;  %v1737_v22 = vmul.f32 1.442695, %v1678_v9  ;;  %v3320_v35 = vmul.f32 0.5, %v3175_v30  ;;  %v1739_v25 = vmul.f32 1.442695, %v1679_v41 }
 0x49c   : > { %2305 = vpow2.f32 %v1731_v51  ;;  %v3325_v19 = vmul.f32 0.5, %v3177_v47  ;;  %v3328_v10 = vmul.f32 0.5, %v3179_v13  ;;  %v1741_v56 = vmul.f32 1.442695, %v1680_v43 }
 0x49d   : > { %2307 = vpow2.f32 %v1733_v45  ;;  %v3333_v53 = vmul.f32 0.5, %v3181_v6  ;;  %v1743_v54 = vmul.f32 1.442695, %v1681_v29  ;;  %v3339_v37 = vmul.f32 0.5, %v3185_v27 }
 0x49e   : > { %2309 = vpow2.f32 %v1735_v18  ;;  %v1745_v13 = vmul.f32 1.442695, %v1682_v5  ;;  %v3345_v4 = vmul.f32 0.5, %v3519_v62  ;;  %v3351_v7 = vmul.f32 0.5, %v3192_v58 }
 0x49f   : > { %2311 = vpow2.f32 %v1737_v22  ;;  %vm1835_vm14 = vcmp.ge.f32.partialorder %v3200_v48, 0.0  ;;  %vm1836_vm15 = vcmp.ge.f32.partialorder %v3203_v57, 0.0  ;;  %vm1837_vm0 = vcmp.ge.f32.partialorder %v3209_v55, 0.0 }
 0x4a0   : > { %2313 = vpow2.f32 %v1739_v25  ;;  %vm1838_vm1 = vcmp.ge.f32.partialorder %v3215_v49, 0.0  ;;  %vm1839_vm2 = vcmp.ge.f32.partialorder %v3222_v34, 0.0  ;;  %vm1840_vm3 = vcmp.ge.f32.partialorder %v3229_v20, 0.0 }
 0x4a1   : > { %v3322_v23 = vpop.eup %2289  ;;  %2315 = vpow2.f32 %v1741_v56  ;;  %vm1841_vm4 = vcmp.ge.f32.partialorder %v3299_v42, 0.0  ;;  %vm1842_vm5 = vcmp.ge.f32.partialorder %v3302_v0, 0.0  ;;  %v1170_v42 = vmul.f32 0.5, %v3194_v15 }
 0x4a2   : > { %v3330_v36 = vpop.eup %2291  ;;  %v1355_v30 = vmul.f32 1.0614054, %v3322_v23  ;;  %2317 = vpow2.f32 %v1743_v54 }
 0x4a3   : > { %v3336_v28 = vpop.eup %2293  ;;  %v1356_v47 = vmul.f32 1.0614054, %v3330_v36  ;;  %2319 = vpow2.f32 %v1745_v13 }
 0x4a4   : > { %v3342_v26 = vpop.eup %2295  ;;  %v1357_v6 = vmul.f32 1.0614054, %v3336_v28  ;;  %v1387_v11 = vadd.f32 -1.4531521, %v1355_v30 }
 0x4a5   : > { %v3348_v52 = vpop.eup %2297  ;;  %v1358_v27 = vmul.f32 1.0614054, %v3342_v26  ;;  %v1388_v1 = vadd.f32 -1.4531521, %v1356_v47 }
 0x4a6   : > { %v3354_v60 = vpop.eup %2299  ;;  %v1359_v21 = vmul.f32 1.0614054, %v3348_v52  ;;  %v1389_v16 = vadd.f32 -1.4531521, %v1357_v6  ;;  %v1419_v59 = vmul.f32 %v3322_v23, %v1387_v11 }
 0x4a7   : > { %v3358_v40 = vpop.eup %2301  ;;  %v1360_v8 = vmul.f32 1.0614054, %v3354_v60  ;;  %v1390_v32 = vadd.f32 -1.4531521, %v1358_v27  ;;  %v1420_v58 = vmul.f32 %v3330_v36, %v1388_v1 }
 0x4a8   : > { %v3362_v24 = vpop.eup %2303  ;;  %v1361_v17 = vmul.f32 1.0614054, %v3358_v40  ;;  %v1391_v14 = vadd.f32 -1.4531521, %v1359_v21  ;;  %v1421_v44 = vmul.f32 %v3336_v28, %v1389_v16  ;;  %v1451_v50 = vadd.f32 1.4214138, %v1419_v59 }
 0x4a9   : > { %v1362_v2 = vmul.f32 1.0614054, %v3362_v24  ;;  %v1392_v38 = vadd.f32 -1.4531521, %v1360_v8  ;;  %v1422_v3 = vmul.f32 %v3342_v26, %v1390_v32  ;;  %v1452_v61 = vadd.f32 1.4214138, %v1420_v58  ;;  %v2306_v18 = vpop.eup %2305 }
 0x4aa   : > { %v1393_v33 = vadd.f32 -1.4531521, %v1361_v17  ;;  %v1423_v63 = vmul.f32 %v3348_v52, %v1391_v14  ;;  %v1453_v12 = vadd.f32 1.4214138, %v1421_v44  ;;  %v1483_v39 = vmul.f32 %v3322_v23, %v1451_v50  ;;  %v2308_v30 = vpop.eup %2307 }
 0x4ab   : > { %v1394_v31 = vadd.f32 -1.4531521, %v1362_v2  ;;  %v1424_v46 = vmul.f32 %v3354_v60, %v1392_v38  ;;  %v1454_v9 = vadd.f32 1.4214138, %v1422_v3  ;;  %v1484_v41 = vmul.f32 %v3330_v36, %v1452_v61  ;;  %v2310_v6 = vpop.eup %2309 }
 0x4ac   : > { %v1425_v51 = vmul.f32 %v3358_v40, %v1393_v33  ;;  %v1455_v43 = vadd.f32 1.4214138, %v1423_v63  ;;  %v1485_v45 = vmul.f32 %v3336_v28, %v1453_v12  ;;  %v1515_v29 = vadd.f32 -0.28449672, %v1483_v39  ;;  %v2312_v16 = vpop.eup %2311 }
 0x4ad   : > { %v1426_v5 = vmul.f32 %v3362_v24, %v1394_v31  ;;  %v1456_v22 = vadd.f32 1.4214138, %v1424_v46  ;;  %v1486_v25 = vmul.f32 %v3342_v26, %v1454_v9  ;;  %v1516_v56 = vadd.f32 -0.28449672, %v1484_v41  ;;  %v2314_v17 = vpop.eup %2313 }
 0x4ae   : > { %v1457_v54 = vadd.f32 1.4214138, %v1425_v51  ;;  %v1487_v47 = vmul.f32 %v3348_v52, %v1455_v43  ;;  %v1517_v13 = vadd.f32 -0.28449672, %v1485_v45  ;;  %v1547_v62 = vmul.f32 %v3322_v23, %v1515_v29  ;;  %v2316_v38 = vpop.eup %2315 }
 0x4af   : > { %v1458_v11 = vadd.f32 1.4214138, %v1426_v5  ;;  %v1488_v27 = vmul.f32 %v3354_v60, %v1456_v22  ;;  %v1518_v1 = vadd.f32 -0.28449672, %v1486_v25  ;;  %v1548_v21 = vmul.f32 %v3330_v36, %v1516_v56  ;;  %v2318_v12 = vpop.eup %2317 }
 0x4b0   : > { %v1489_v59 = vmul.f32 %v3358_v40, %v1457_v54  ;;  %v1519_v8 = vadd.f32 -0.28449672, %v1487_v47  ;;  %v1549_v32 = vmul.f32 %v3336_v28, %v1517_v13  ;;  %v1579_v58 = vadd.f32 0.2548296, %v1547_v62  ;;  %v2320_v41 = vpop.eup %2319 }
 0x4b1   : > { %v1490_v14 = vmul.f32 %v3362_v24, %v1458_v11  ;;  %v1520_v44 = vadd.f32 -0.28449672, %v1488_v27  ;;  %v1550_v50 = vmul.f32 %v3342_v26, %v1518_v1  ;;  %v1580_v2 = vadd.f32 0.2548296, %v1548_v21 }
 0x4b2   : > { %v1521_v3 = vadd.f32 -0.28449672, %v1489_v59  ;;  %v1551_v61 = vmul.f32 %v3348_v52, %v1519_v8  ;;  %v1581_v33 = vadd.f32 0.2548296, %v1549_v32  ;;  %v1611_v63 = vmul.f32 %v3322_v23, %v1579_v58 }
 0x4b3   : > { %v1522_v39 = vadd.f32 -0.28449672, %v1490_v14  ;;  %v1552_v31 = vmul.f32 %v3354_v60, %v1520_v44  ;;  %v1582_v46 = vadd.f32 0.2548296, %v1550_v50  ;;  %v1612_v9 = vmul.f32 %v3330_v36, %v1580_v2 }
 0x4b4   : > { %v1553_v51 = vmul.f32 %v3358_v40, %v1521_v3  ;;  %v1583_v43 = vadd.f32 0.2548296, %v1551_v61  ;;  %v1613_v45 = vmul.f32 %v3336_v28, %v1581_v33  ;;  %v1771_v29 = vmul.f32 %v2306_v18, %v1611_v63 }
 0x4b5   : > { %v1554_v23 = vmul.f32 %v3362_v24, %v1522_v39  ;;  %v1584_v5 = vadd.f32 0.2548296, %v1552_v31  ;;  %v1614_v22 = vmul.f32 %v3342_v26, %v1582_v46  ;;  %v1772_v25 = vmul.f32 %v2308_v30, %v1612_v9 }
 0x4b6   : > { %v1585_v36 = vadd.f32 0.2548296, %v1553_v51  ;;  %v1615_v56 = vmul.f32 %v3348_v52, %v1583_v43  ;;  %v1773_v54 = vmul.f32 %v2310_v6, %v1613_v45  ;;  %v1803_v47 = vsub.f32 1.0, %v1771_v29 }
 0x4b7   : > { %v1586_v13 = vadd.f32 0.2548296, %v1554_v23  ;;  %v1616_v28 = vmul.f32 %v3354_v60, %v1584_v5  ;;  %v1774_v18 = vmul.f32 %v2312_v16, %v1614_v22  ;;  %v1804_v62 = vsub.f32 1.0, %v1772_v25 }
 0x4b8   : > { %v1617_v11 = vmul.f32 %v3358_v40, %v1585_v36  ;;  %v1775_v26 = vmul.f32 %v2314_v17, %v1615_v56  ;;  %v1805_v30 = vsub.f32 1.0, %v1773_v54  ;;  %v1867_v27 = vsub.f32 0.0, %v1803_v47 }
 0x4b9   : > { %v1618_v52 = vmul.f32 %v3362_v24, %v1586_v13  ;;  %v1776_v6 = vmul.f32 %v2316_v38, %v1616_v28  ;;  %v1806_v1 = vsub.f32 1.0, %v1774_v18  ;;  %v1868_v21 = vsub.f32 0.0, %v1804_v62 }
 0x4ba   : > { %v1777_v59 = vmul.f32 %v2318_v12, %v1617_v11  ;;  %v1807_v8 = vsub.f32 1.0, %v1775_v26  ;;  %v1869_v32 = vsub.f32 0.0, %v1805_v30  ;;  %v1899_v60 = vsel %vm1835_vm14, %v1803_v47, %v1867_v27 }
 0x4bb   : > { %v1778_v16 = vmul.f32 %v2320_v41, %v1618_v52  ;;  %v1808_v58 = vsub.f32 1.0, %v1776_v6  ;;  %v1870_v14 = vsub.f32 0.0, %v1806_v1  ;;  %v1900_v40 = vsel %vm1836_vm15, %v1804_v62, %v1868_v21 }
 0x4bc   : > { %v1809_v17 = vsub.f32 1.0, %v1777_v59  ;;  %v1871_v44 = vsub.f32 0.0, %v1807_v8  ;;  %v1901_v24 = vsel %vm1837_vm0, %v1805_v30, %v1869_v32  ;;  %v1931_v50 = vadd.f32 1.0, %v1899_v60 }
 0x4bd   : > { %v1810_v2 = vsub.f32 1.0, %v1778_v16  ;;  %v1872_v38 = vsub.f32 0.0, %v1808_v58  ;;  %v1902_v3 = vsel %vm1838_vm1, %v1806_v1, %v1870_v14  ;;  %v1932_v61 = vadd.f32 1.0, %v1900_v40 }
 0x4be   : > { %v1873_v48 = vsub.f32 0.0, %v1809_v17  ;;  %v1903_v33 = vsel %vm1839_vm2, %v1807_v8, %v1871_v44  ;;  %v1933_v63 = vadd.f32 1.0, %v1901_v24  ;;  %v1934_v57 = vadd.f32 1.0, %v1902_v3 }
 0x4bf   : > { %v1874_v12 = vsub.f32 0.0, %v1810_v2  ;;  %v1904_v55 = vsel %vm1840_vm3, %v1808_v58, %v1872_v38  ;;  %v1935_v39 = vadd.f32 1.0, %v1903_v33  ;;  %v1963_v31 = vmul.f32 %v1931_v50, %v3320_v35 }
 0x4c0   : > { %v1905_v49 = vsel %vm1841_vm4, %v1809_v17, %v1873_v48  ;;  %v1936_v46 = vadd.f32 1.0, %v1904_v55  ;;  %v1964_v34 = vmul.f32 %v1932_v61, %v3325_v19  ;;  %v1965_v9 = vmul.f32 %v1933_v63, %v3328_v10 }
 0x4c1   : > { %v1906_v20 = vsel %vm1842_vm5, %v1810_v2, %v1874_v12  ;;  %v1937_v41 = vadd.f32 1.0, %v1905_v49  ;;  %v1966_v51 = vmul.f32 %v1934_v57, %v3333_v53  ;;  %v1967_v35 = vmul.f32 %v1935_v39, %v3339_v37  ;;  %1995 = vst [vmem:[%s2901_s8 + $0xc0] sm:$0xff] %v1963_v31 }
 0x4c2   : > { %v1938_v43 = vadd.f32 1.0, %v1906_v20  ;;  %v1968_v45 = vmul.f32 %v1936_v46, %v3345_v4  ;;  %1996 = vst [vmem:[%s2901_s8 + $0xc8] sm:$0xff] %v1964_v34  ;;  %1997 = vst [vmem:[%s2901_s8 + $0xd0] sm:$0xff] %v1965_v9 }
 0x4c3   : > { %v1969_v19 = vmul.f32 %v1937_v41, %v3351_v7  ;;  %1998 = vst [vmem:[%s2901_s8 + $0xd8] sm:$0xff] %v1966_v51  ;;  %1999 = vst [vmem:[%s2901_s8 + $0xe0] sm:$0xff] %v1967_v35 }
 0x4c4   : > { %v1970_v0 = vmul.f32 %v1938_v43, %v1170_v42  ;;  %2000 = vst [vmem:[%s2901_s8 + $0xe8] sm:$0xff] %v1968_v45 }
 0x4c5   : > { %2001 = vst [vmem:[%s2901_s8 + $0xf0] sm:$0xff] %v1969_v19 }
 0x4c6   : > { %2002 = vst [vmem:[%s2901_s8 + $0xf8] sm:$0xff] %v1970_v0 }
 0x4c7 PF: > { %s13_s12 = sadd.s32 1, %s2327_s12  }
 0x4c8   : > { %p10_p4 = scmp.ge.s32.totalorder %s13_s12, 4  }
 0x4ca   :  { %12 = sbr.rel (!%p10_p4) target bundleno = 1 (0x1), region = 62 }

</bundles_post_ra>
